<compile_context>
chip_gen: v7x
topology: tpu7x:2x2x1
jax: 0.10.0
libtpu: 0.0.40
codegen_flags: <defaults>
</compile_context>

<pallas_src>
import functools

import jax
import jax.numpy as jnp
from jax.experimental import pallas as pl
from jax.experimental.pallas import tpu as pltpu

STATE_DIM = 784
N_LATENT = 256
ACTION_DIM = 49
HEAD_PAD = 128          # fused head output width: 49 probs + 1 value + zero pad

# Lane-aligned offsets inside the packed bias array (all multiples of 128).
_B1_OFF, _B1_N = 0, 2 * N_LATENT          # fused actor+critic layer-1 bias (512)
_AB2_OFF, _AB2_N = 512, 512
_AB3_OFF, _AB3_N = 1024, 128
_VB2_OFF, _VB2_N = 1152, 512
_VB3_OFF, _VB3_N = 1664, 128
_B4_OFF, _B4_N = 1792, HEAD_PAD           # fused head bias (49 + 1 + pad)
_BIAS_TOTAL = 1920


def _actor_critic_kernel(
    x_ref,                                  # (bm, 784) f32 (cast to bf16 in-kernel)
    w1_ref,                                 # (784, 512) bf16  [actor | critic] fused layer 1
    aw2_ref, aw3_ref,                       # actor layers 2..3, bf16
    vw2_ref, vw3_ref,                       # critic layers 2..3, bf16
    w4_ref,                                 # (256, 128) bf16 fused actor/critic head
    b_ref,                                  # (1, 1920) f32 packed biases
    out_ref,                                # (bm, 128) f32: probs[0:49], value at col 49
    *, tanh_bf16,
):
    # In-kernel cast to bf16 (VPU) hides under the layer-1 MXU work and avoids
    # a separate wrapper-side HBM pass over x.
    x = x_ref[...].astype(jnp.bfloat16)

    def bias(off, n):
        return b_ref[:, off:off + n]        # static, lane-aligned slice

    def act(h):
        if tanh_bf16:                       # v6e/v7x: bf16-capable EUP
            return jnp.tanh(h.astype(jnp.bfloat16))
        return jnp.tanh(h).astype(jnp.bfloat16)

    def layer(h, w_ref, off, n):
        return act(jnp.dot(h, w_ref[...], preferred_element_type=jnp.float32)
                   + bias(off, n))

    # ----- fused layer 1 (actor & critic share the input) -----
    h1 = layer(x, w1_ref, _B1_OFF, _B1_N)   # (bm, 512) bf16
    ha = h1[:, :N_LATENT]                   # (bm, 256)
    hv = h1[:, N_LATENT:]                   # (bm, 256)

    # ----- actor / critic trunks -----
    ha = layer(ha, aw2_ref, _AB2_OFF, _AB2_N)       # (bm, 512)
    ha = layer(ha, aw3_ref, _AB3_OFF, _AB3_N)       # (bm, 128)
    hv = layer(hv, vw2_ref, _VB2_OFF, _VB2_N)       # (bm, 512)
    hv = layer(hv, vw3_ref, _VB3_OFF, _VB3_N)       # (bm, 128)

    # ----- fused head: one (bm,256)@(256,128) matmul, lane-dense output -----
    h = jnp.concatenate([ha, hv], axis=1)           # (bm, 256) bf16
    head = jnp.dot(h, w4_ref[...], preferred_element_type=jnp.float32) \
        + bias(_B4_OFF, _B4_N)                      # (bm, 128) f32

    lane = jax.lax.broadcasted_iota(jnp.int32, head.shape, 1)
    is_logit = lane < ACTION_DIM                    # cols 0..48 are logits

    # Stable softmax over the 49 logit lanes only; exact reciprocal so probs
    # sum to 1 (denominator is only (bm,1) -> essentially free).
    masked = jnp.where(is_logit, head, -jnp.inf)
    m = jnp.max(masked, axis=-1, keepdims=True)
    e = jnp.exp(masked - m)                         # padded/value lanes -> exp(-inf)=0
    denom = jnp.sum(e, axis=-1, keepdims=True)
    probs = e * pl.reciprocal(denom, approx=False)

    # Single lane-dense store: probs in cols 0..48, state value at col 49,
    # zeros elsewhere (head weight/bias are zero on padding columns).
    out_ref[...] = jnp.where(is_logit, probs, head)


def pack_params(params):
    """Fuse layer-1 and head weights, cast weights to bf16, pack biases."""
    (aw1, ab1, aw2, ab2, aw3, ab3, aw4, ab4,
     vw1, vb1, vw2, vb2, vw3, vb3, vw4, vb4) = params

    h3 = N_LATENT // 2                                               # 128

    w1 = jnp.concatenate([aw1, vw1], axis=1).astype(jnp.bfloat16)    # (784, 512)

    # Fused head weight: [ha3 | hv3](bm,256) @ w4(256,128)
    #   rows 0..127 / cols 0..48  <- actor layer-4 weight
    #   rows 128..255 / col 49    <- critic layer-4 weight
    w4 = jnp.zeros((2 * h3, HEAD_PAD), jnp.float32)
    w4 = w4.at[:h3, :ACTION_DIM].set(aw4)
    w4 = w4.at[h3:, ACTION_DIM:ACTION_DIM + 1].set(vw4)
    w4 = w4.astype(jnp.bfloat16)

    ws = (w1,
          aw2.astype(jnp.bfloat16), aw3.astype(jnp.bfloat16),
          vw2.astype(jnp.bfloat16), vw3.astype(jnp.bfloat16),
          w4)

    b4 = jnp.zeros((HEAD_PAD,), jnp.float32)
    b4 = b4.at[:ACTION_DIM].set(ab4.reshape(-1))
    b4 = b4.at[ACTION_DIM].set(vb4.reshape(-1)[0])

    biases = jnp.concatenate([
        ab1.reshape(-1), vb1.reshape(-1),   # 512 @ 0
        ab2.reshape(-1),                    # 512 @ 512
        ab3.reshape(-1),                    # 128 @ 1024
        vb2.reshape(-1),                    # 512 @ 1152
        vb3.reshape(-1),                    # 128 @ 1664
        b4,                                 # 128 @ 1792
    ]).astype(jnp.float32).reshape(1, _BIAS_TOTAL)
    return ws, biases


def _round_up(n, m):
    return ((n + m - 1) // m) * m


def _default_tanh_bf16():
    """bf16 tanh only where the EUP is bf16-capable (v6e / v7x)."""
    try:
        kind = jax.devices()[0].device_kind.lower()
    except Exception:
        return True
    return ("v6" in kind) or ("v7" in kind)


def actor_critic_forward(x, packed, *, block_batch=512, tanh_bf16=None):
    """x: (B, STATE_DIM) f32.  packed: output of pack_params().

    Returns (probs (B,49) f32, value (B,1) f32).
    """
    ws, biases = packed
    if tanh_bf16 is None:
        tanh_bf16 = _default_tanh_bf16()
    B = x.shape[0]

    # Batch tile: multiple of 8, at most block_batch.
    bm = min(block_batch, _round_up(B, 8))
    # If the grid would have a single step, halve the tile so v7x's two
    # TensorCores both get work (and the pipeline has >1 stage).
    if _round_up(B, bm) // bm == 1:
        half = _round_up(pl.cdiv(bm, 2), 8)
        if 8 <= half < bm:
            bm = half

    # Pad the batch up to a tile multiple instead of collapsing to one block.
    B_pad = _round_up(B, bm)
    if B_pad != B:
        x = jnp.pad(x, ((0, B_pad - B), (0, 0)))
    grid = (B_pad // bm,)

    def resident(shape):
        # weights/biases: constant block index -> fetched once, VMEM-resident
        return pl.BlockSpec(shape, lambda i: (0, 0))

    in_specs = (
        [pl.BlockSpec((bm, STATE_DIM), lambda i: (i, 0))]
        + [resident(w.shape) for w in ws]
        + [resident(biases.shape)]
    )
    out_specs = pl.BlockSpec((bm, HEAD_PAD), lambda i: (i, 0))

    out = pl.pallas_call(
        functools.partial(_actor_critic_kernel, tanh_bf16=tanh_bf16),
        out_shape=jax.ShapeDtypeStruct((B_pad, HEAD_PAD), jnp.float32),
        grid_spec=pltpu.PrefetchScalarGridSpec(
            num_scalar_prefetch=0,
            grid=grid,
            in_specs=in_specs,
            out_specs=out_specs,
        ),
        compiler_params=pltpu.CompilerParams(
            dimension_semantics=("parallel",),
            vmem_limit_bytes=32 << 20,
        ),
    )(x, *ws, biases)

    probs = out[:B, :ACTION_DIM]
    value = out[:B, ACTION_DIM:ACTION_DIM + 1]
    return probs, value


def init_params(key):
    """Deterministic init matching PyTorch Linear shapes (stored transposed), f32."""
    in_dims = [STATE_DIM, N_LATENT, N_LATENT * 2, N_LATENT // 2]     # 784,256,512,128
    out_dims_actor = [N_LATENT, N_LATENT * 2, N_LATENT // 2, ACTION_DIM]
    out_dims_value = [N_LATENT, N_LATENT * 2, N_LATENT // 2, 1]

    def make_head(key, out_dims):
        params = []
        for din, dout in zip(in_dims, out_dims):
            key, kw, kb = jax.random.split(key, 3)
            bound = 1.0 / jnp.sqrt(jnp.float32(din))
            w = jax.random.uniform(kw, (din, dout), jnp.float32, -bound, bound)
            b = jax.random.uniform(kb, (1, dout), jnp.float32, -bound, bound)
            params += [w, b]
        return key, params

    key, actor = make_head(key, out_dims_actor)
    key, critic = make_head(key, out_dims_value)
    return tuple(actor + critic)


def reference_forward(x, params):
    """Pure-JAX f32 reference (matches the PyTorch module semantics)."""
    (aw1, ab1, aw2, ab2, aw3, ab3, aw4, ab4,
     vw1, vb1, vw2, vb2, vw3, vb3, vw4, vb4) = params
    ha = jnp.tanh(x @ aw1 + ab1)
    ha = jnp.tanh(ha @ aw2 + ab2)
    ha = jnp.tanh(ha @ aw3 + ab3)
    probs = jax.nn.softmax(ha @ aw4 + ab4, axis=-1)
    hv = jnp.tanh(x @ vw1 + vb1)
    hv = jnp.tanh(hv @ vw2 + vb2)
    hv = jnp.tanh(hv @ vw3 + vb3)
    value = hv @ vw4 + vb4
    return probs, value


# TODO(synk): Categorical log_prob / entropy from `evaluate` are cheap
# post-processing on the returned probs and are left to the caller.

if __name__ == "__main__":
    key = jax.random.PRNGKey(0)
    key, kx = jax.random.split(key)

    params = init_params(key)
    packed = pack_params(params)

    # ---- small-batch check (single tile, padded 8 -> 8) ----
    batch = 8
    x = jax.random.normal(kx, (batch, STATE_DIM), jnp.float32)
    probs, value = jax.block_until_ready(actor_critic_forward(x, packed))

    ref_probs, ref_value = reference_forward(x, params)
    assert probs.shape == (batch, ACTION_DIM)
    assert value.shape == (batch, 1)
    # bf16 weights/activations -> compare against the f32 reference with a
    # correspondingly loosened tolerance.
    assert jnp.allclose(probs, ref_probs, atol=2e-2, rtol=2e-2)
    assert jnp.allclose(value, ref_value, atol=5e-2, rtol=5e-2)
    # exact reciprocal -> probabilities sum to 1 to f32 precision
    assert jnp.allclose(jnp.sum(probs, axis=-1), 1.0, atol=1e-3)

    # ---- non-multiple batch exercising batch padding + multi-tile grid ----
    key, kx2 = jax.random.split(key)
    batch2 = 300                      # pads to 304, tile 152, grid=(2,)
    x2 = jax.random.normal(kx2, (batch2, STATE_DIM), jnp.float32)
    probs2, value2 = jax.block_until_ready(actor_critic_forward(x2, packed))
    ref_probs2, ref_value2 = reference_forward(x2, params)
    assert probs2.shape == (batch2, ACTION_DIM)
    assert value2.shape == (batch2, 1)
    assert jnp.allclose(probs2, ref_probs2, atol=2e-2, rtol=2e-2)
    assert jnp.allclose(value2, ref_value2, atol=5e-2, rtol=5e-2)

    print("KERNEL_OK")
</pallas_src>

<mosaic_0001>
module attributes {stable_mosaic.version = 11 : i64} {
  func.func @_actor_critic_kernel(%arg0: i32, %arg1: memref<8x784xf32, #tpu.memory_space<vmem>>, %arg2: memref<784x512xbf16, #tpu.memory_space<vmem>>, %arg3: memref<256x512xbf16, #tpu.memory_space<vmem>>, %arg4: memref<512x128xbf16, #tpu.memory_space<vmem>>, %arg5: memref<256x512xbf16, #tpu.memory_space<vmem>>, %arg6: memref<512x128xbf16, #tpu.memory_space<vmem>>, %arg7: memref<256x128xbf16, #tpu.memory_space<vmem>>, %arg8: memref<1x1920xf32, #tpu.memory_space<vmem>>, %arg9: memref<8x128xf32, #tpu.memory_space<vmem>>) attributes {dimension_semantics = [#tpu.dimension_semantics<parallel>], iteration_bounds = array<i64: 1>, scalar_prefetch = 0 : i64, scratch_operands = 0 : i64, tpu.core_type = #tpu.core_type<tc>, window_params = [{transform_indices = @transform_0, window_bounds = array<i64: 8, 784>}, {pipeline_mode = #tpu.pipeline_mode<synchronous>, transform_indices = @transform_1, window_bounds = array<i64: 784, 512>}, {pipeline_mode = #tpu.pipeline_mode<synchronous>, transform_indices = @transform_2, window_bounds = array<i64: 256, 512>}, {pipeline_mode = #tpu.pipeline_mode<synchronous>, transform_indices = @transform_3, window_bounds = array<i64: 512, 128>}, {pipeline_mode = #tpu.pipeline_mode<synchronous>, transform_indices = @transform_4, window_bounds = array<i64: 256, 512>}, {pipeline_mode = #tpu.pipeline_mode<synchronous>, transform_indices = @transform_5, window_bounds = array<i64: 512, 128>}, {pipeline_mode = #tpu.pipeline_mode<synchronous>, transform_indices = @transform_6, window_bounds = array<i64: 256, 128>}, {pipeline_mode = #tpu.pipeline_mode<synchronous>, transform_indices = @transform_7, window_bounds = array<i64: 1, 1920>}, {transform_indices = @transform_8, window_bounds = array<i64: 8, 128>}]} {
    %c0 = arith.constant 0 : index
    %c0_0 = arith.constant 0 : index
    %0 = vector.load %arg1[%c0, %c0_0] : memref<8x784xf32, #tpu.memory_space<vmem>>, vector<8x784xf32>
    %1 = arith.truncf %0 : vector<8x784xf32> to vector<8x784xbf16>
    %c0_1 = arith.constant 0 : index
    %c0_2 = arith.constant 0 : index
    %2 = vector.load %arg2[%c0_1, %c0_2] : memref<784x512xbf16, #tpu.memory_space<vmem>>, vector<784x512xbf16>
    %cst = arith.constant dense<0.000000e+00> : vector<8x512xf32>
    %3 = tpu.matmul %1, %2, %cst {dimension_numbers = #tpu.dot_dimension_numbers<[1], [0], [0], [1], [0, 0, 1, 1], [], []>} : vector<8x784xbf16>, vector<784x512xbf16>, vector<8x512xf32> -> vector<8x512xf32>
    %c0_3 = arith.constant 0 : index
    %c0_4 = arith.constant 0 : index
    %4 = vector.load %arg8[%c0_3, %c0_4] : memref<1x1920xf32, #tpu.memory_space<vmem>>, vector<1x512xf32>
    %5 = vector.broadcast %4 : vector<1x512xf32> to vector<8x512xf32>
    %6 = arith.addf %3, %5 : vector<8x512xf32>
    %7 = math.tanh %6 : vector<8x512xf32>
    %8 = arith.truncf %7 : vector<8x512xf32> to vector<8x512xbf16>
    %9 = vector.extract_strided_slice %8 {offsets = [0, 0], sizes = [8, 256], strides = [1, 1]} : vector<8x512xbf16> to vector<8x256xbf16>
    %10 = vector.extract_strided_slice %8 {offsets = [0, 256], sizes = [8, 256], strides = [1, 1]} : vector<8x512xbf16> to vector<8x256xbf16>
    %c0_5 = arith.constant 0 : index
    %c0_6 = arith.constant 0 : index
    %11 = vector.load %arg3[%c0_5, %c0_6] : memref<256x512xbf16, #tpu.memory_space<vmem>>, vector<256x512xbf16>
    %cst_7 = arith.constant dense<0.000000e+00> : vector<8x512xf32>
    %12 = tpu.matmul %9, %11, %cst_7 {dimension_numbers = #tpu.dot_dimension_numbers<[1], [0], [0], [1], [0, 0, 1, 1], [], []>} : vector<8x256xbf16>, vector<256x512xbf16>, vector<8x512xf32> -> vector<8x512xf32>
    %c0_8 = arith.constant 0 : index
    %c512 = arith.constant 512 : index
    %13 = vector.load %arg8[%c0_8, %c512] : memref<1x1920xf32, #tpu.memory_space<vmem>>, vector<1x512xf32>
    %14 = vector.broadcast %13 : vector<1x512xf32> to vector<8x512xf32>
    %15 = arith.addf %12, %14 : vector<8x512xf32>
    %16 = math.tanh %15 : vector<8x512xf32>
    %17 = arith.truncf %16 : vector<8x512xf32> to vector<8x512xbf16>
    %c0_9 = arith.constant 0 : index
    %c0_10 = arith.constant 0 : index
    %18 = vector.load %arg4[%c0_9, %c0_10] : memref<512x128xbf16, #tpu.memory_space<vmem>>, vector<512x128xbf16>
    %cst_11 = arith.constant dense<0.000000e+00> : vector<8x128xf32>
    %19 = tpu.matmul %17, %18, %cst_11 {dimension_numbers = #tpu.dot_dimension_numbers<[1], [0], [0], [1], [0, 0, 1, 1], [], []>} : vector<8x512xbf16>, vector<512x128xbf16>, vector<8x128xf32> -> vector<8x128xf32>
    %c0_12 = arith.constant 0 : index
    %c1024 = arith.constant 1024 : index
    %20 = vector.load %arg8[%c0_12, %c1024] : memref<1x1920xf32, #tpu.memory_space<vmem>>, vector<1x128xf32>
    %21 = vector.broadcast %20 : vector<1x128xf32> to vector<8x128xf32>
    %22 = arith.addf %19, %21 : vector<8x128xf32>
    %23 = math.tanh %22 : vector<8x128xf32>
    %24 = arith.truncf %23 : vector<8x128xf32> to vector<8x128xbf16>
    %c0_13 = arith.constant 0 : index
    %c0_14 = arith.constant 0 : index
    %25 = vector.load %arg5[%c0_13, %c0_14] : memref<256x512xbf16, #tpu.memory_space<vmem>>, vector<256x512xbf16>
    %cst_15 = arith.constant dense<0.000000e+00> : vector<8x512xf32>
    %26 = tpu.matmul %10, %25, %cst_15 {dimension_numbers = #tpu.dot_dimension_numbers<[1], [0], [0], [1], [0, 0, 1, 1], [], []>} : vector<8x256xbf16>, vector<256x512xbf16>, vector<8x512xf32> -> vector<8x512xf32>
    %c0_16 = arith.constant 0 : index
    %c1152 = arith.constant 1152 : index
    %27 = vector.load %arg8[%c0_16, %c1152] : memref<1x1920xf32, #tpu.memory_space<vmem>>, vector<1x512xf32>
    %28 = vector.broadcast %27 : vector<1x512xf32> to vector<8x512xf32>
    %29 = arith.addf %26, %28 : vector<8x512xf32>
    %30 = math.tanh %29 : vector<8x512xf32>
    %31 = arith.truncf %30 : vector<8x512xf32> to vector<8x512xbf16>
    %c0_17 = arith.constant 0 : index
    %c0_18 = arith.constant 0 : index
    %32 = vector.load %arg6[%c0_17, %c0_18] : memref<512x128xbf16, #tpu.memory_space<vmem>>, vector<512x128xbf16>
    %cst_19 = arith.constant dense<0.000000e+00> : vector<8x128xf32>
    %33 = tpu.matmul %31, %32, %cst_19 {dimension_numbers = #tpu.dot_dimension_numbers<[1], [0], [0], [1], [0, 0, 1, 1], [], []>} : vector<8x512xbf16>, vector<512x128xbf16>, vector<8x128xf32> -> vector<8x128xf32>
    %c0_20 = arith.constant 0 : index
    %c1664 = arith.constant 1664 : index
    %34 = vector.load %arg8[%c0_20, %c1664] : memref<1x1920xf32, #tpu.memory_space<vmem>>, vector<1x128xf32>
    %35 = vector.broadcast %34 : vector<1x128xf32> to vector<8x128xf32>
    %36 = arith.addf %33, %35 : vector<8x128xf32>
    %37 = math.tanh %36 : vector<8x128xf32>
    %38 = arith.truncf %37 : vector<8x128xf32> to vector<8x128xbf16>
    %39 = tpu.concatenate %24, %38 in 1 : vector<8x128xbf16>, vector<8x128xbf16> -> vector<8x256xbf16>
    %c0_21 = arith.constant 0 : index
    %c0_22 = arith.constant 0 : index
    %40 = vector.load %arg7[%c0_21, %c0_22] : memref<256x128xbf16, #tpu.memory_space<vmem>>, vector<256x128xbf16>
    %cst_23 = arith.constant dense<0.000000e+00> : vector<8x128xf32>
    %41 = tpu.matmul %39, %40, %cst_23 {dimension_numbers = #tpu.dot_dimension_numbers<[1], [0], [0], [1], [0, 0, 1, 1], [], []>} : vector<8x256xbf16>, vector<256x128xbf16>, vector<8x128xf32> -> vector<8x128xf32>
    %c0_24 = arith.constant 0 : index
    %c1792 = arith.constant 1792 : index
    %42 = vector.load %arg8[%c0_24, %c1792] : memref<1x1920xf32, #tpu.memory_space<vmem>>, vector<1x128xf32>
    %43 = vector.broadcast %42 : vector<1x128xf32> to vector<8x128xf32>
    %44 = arith.addf %41, %43 : vector<8x128xf32>
    %45 = tpu.iota {dimensions = array<i32: 1>} : vector<8x128xi32>
    %c49_i32 = arith.constant 49 : i32
    %46 = vector.broadcast %c49_i32 : i32 to vector<8x128xi32>
    %47 = arith.cmpi slt, %45, %46 : vector<8x128xi32>
    %cst_25 = arith.constant 0xFF800000 : f32
    %48 = vector.broadcast %cst_25 : f32 to vector<8x128xf32>
    %49 = arith.select %47, %44, %48 : vector<8x128xi1>, vector<8x128xf32>
    %cst_26 = arith.constant dense<0xFF800000> : vector<8xf32>
    %50 = vector.multi_reduction <maximumf>, %49, %cst_26 [1] : vector<8x128xf32> to vector<8xf32>
    %51 = vector.shape_cast %50 : vector<8xf32> to vector<8x1xf32>
    %52 = vector.broadcast %51 : vector<8x1xf32> to vector<8x128xf32>
    %53 = arith.subf %49, %52 : vector<8x128xf32>
    %54 = math.exp %53 : vector<8x128xf32>
    %cst_27 = arith.constant dense<0.000000e+00> : vector<8xf32>
    %55 = vector.multi_reduction <add>, %54, %cst_27 [1] : vector<8x128xf32> to vector<8xf32>
    %56 = vector.shape_cast %55 : vector<8xf32> to vector<8x1xf32>
    %57 = tpu.reciprocal %56 : vector<8x1xf32> -> vector<8x1xf32>
    %58 = vector.broadcast %57 : vector<8x1xf32> to vector<8x128xf32>
    %59 = arith.mulf %54, %58 : vector<8x128xf32>
    %60 = arith.select %47, %59, %44 : vector<8x128xi1>, vector<8x128xf32>
    %c0_28 = arith.constant 0 : index
    %c0_29 = arith.constant 0 : index
    %61 = vector.load %arg9[%c0_28, %c0_29] : memref<8x128xf32, #tpu.memory_space<vmem>>, vector<8x128xf32>
    tpu.vector_store %arg9[%c0_28, %c0_29], %60 {strides = array<i32>} : memref<8x128xf32, #tpu.memory_space<vmem>>, vector<8x128xf32>,
    return
  }
  func.func @transform_0(%arg0: i32) -> (i32, i32) {
    %c0_i32 = arith.constant 0 : i32
    %c0_i32_0 = arith.constant 0 : i32
    return %arg0, %c0_i32 : i32, i32
  }
  func.func @transform_1(%arg0: i32) -> (i32, i32) {
    %c0_i32 = arith.constant 0 : i32
    %c0_i32_0 = arith.constant 0 : i32
    %c0_i32_1 = arith.constant 0 : i32
    return %c0_i32, %c0_i32_0 : i32, i32
  }
  func.func @transform_2(%arg0: i32) -> (i32, i32) {
    %c0_i32 = arith.constant 0 : i32
    %c0_i32_0 = arith.constant 0 : i32
    %c0_i32_1 = arith.constant 0 : i32
    return %c0_i32, %c0_i32_0 : i32, i32
  }
  func.func @transform_3(%arg0: i32) -> (i32, i32) {
    %c0_i32 = arith.constant 0 : i32
    %c0_i32_0 = arith.constant 0 : i32
    %c0_i32_1 = arith.constant 0 : i32
    return %c0_i32, %c0_i32_0 : i32, i32
  }
  func.func @transform_4(%arg0: i32) -> (i32, i32) {
    %c0_i32 = arith.constant 0 : i32
    %c0_i32_0 = arith.constant 0 : i32
    %c0_i32_1 = arith.constant 0 : i32
    return %c0_i32, %c0_i32_0 : i32, i32
  }
  func.func @transform_5(%arg0: i32) -> (i32, i32) {
    %c0_i32 = arith.constant 0 : i32
    %c0_i32_0 = arith.constant 0 : i32
    %c0_i32_1 = arith.constant 0 : i32
    return %c0_i32, %c0_i32_0 : i32, i32
  }
  func.func @transform_6(%arg0: i32) -> (i32, i32) {
    %c0_i32 = arith.constant 0 : i32
    %c0_i32_0 = arith.constant 0 : i32
    %c0_i32_1 = arith.constant 0 : i32
    return %c0_i32, %c0_i32_0 : i32, i32
  }
  func.func @transform_7(%arg0: i32) -> (i32, i32) {
    %c0_i32 = arith.constant 0 : i32
    %c0_i32_0 = arith.constant 0 : i32
    %c0_i32_1 = arith.constant 0 : i32
    return %c0_i32, %c0_i32_0 : i32, i32
  }
  func.func @transform_8(%arg0: i32) -> (i32, i32) {
    %c0_i32 = arith.constant 0 : i32
    %c0_i32_0 = arith.constant 0 : i32
    return %arg0, %c0_i32 : i32, i32
  }
}

</mosaic_0001>

<bundles_post_ra>
// kernel: tpu_custom_call.1
= control target key start
LH: loop header
LB: loop body
LE: loop exit
PB: predicated region body
PF: predicated region fallthrough
CT: control target
= control target key end

     0   :  { %13 = vsyncpa [#allocation3], 0  ;;  %s5161_s0 = inlined_call_operand.hbm [shape: f32[8,784], index: 0, kind: input, shape index: {}]   ;;  %s5162_s1 = inlined_call_operand.hbm [shape: bf16[784,512], index: 1, kind: input, shape index: {}]   ;;  %s5163_s2 = inlined_call_operand.hbm [shape: bf16[256,512], index: 2, kind: input, shape index: {}]   ;;  %s5164_s3 = inlined_call_operand.hbm [shape: bf16[512,128], index: 3, kind: input, shape index: {}]   ;;  %s5165_s4 = inlined_call_operand.hbm [shape: bf16[256,512], index: 4, kind: input, shape index: {}]   ;;  %s5166_s5 = inlined_call_operand.hbm [shape: bf16[512,128], index: 5, kind: input, shape index: {}]   ;;  %s5167_s6 = inlined_call_operand.hbm [shape: bf16[256,128], index: 6, kind: input, shape index: {}]   ;;  %s5168_s7 = inlined_call_operand.vmem [shape: f32[1,1920], index: 7, kind: input, shape index: {}]   ;;  %s5169_s8 = inlined_call_operand.hbm [shape: f32[8,128], index: 8, kind: output, shape index: {}]  }
   0x1   :  { %14 = vsyncpa [#allocation6], 0 }
   0x2   :  { %15 = vsyncpa [#allocation9], 0 }
   0x3   :  { %16 = vsyncpa [#allocation12], 0 }
   0x4   :  { %17 = vsyncpa [#allocation4], 0  ;;  %s4908_s27 = smov [#allocation5]   ;;  %s4722_s9 = scalar_lea.hbm %s5162_s1, 25088 }
   0x5   :  { %s33_s28 = sshll.u32 %s4908_s27, 4  ;;  %p4723_p0 = scmp.ne.s32.totalorder %s5162_s1, %s4722_s9  ;;  %s34_s28 = int_to_ptr.vmem [resolvable:$true] %s33_s28 }
   0x6   :  { %p4726_p1 = scmp.lt.u32.totalorder %s4722_s9, %s5162_s1 }
   0x8   :  { %p4728_p2 = pnand %p4726_p1, %p4723_p0 }
   0xa   :  { %4731 = shalt.err (!%p4728_p2)
}
   0xb   :  { %s4732_s14 = scalar_lea.vmem %s34_s28, 25088  ;;  %p4737_p4 = scmp.lt.s32.totalorder %s34_s28, %s34_s28 }
   0xc   :  { %p4733_p3 = scmp.ne.s32.totalorder %s34_s28, %s4732_s14  ;;  %p4738_p5 = scmp.lt.s32.totalorder %s4732_s14, %s4732_s14 }
   0xe   :  { %p4739_p6 = por %p4738_p5, %p4737_p4 }
  0x10   :  { %p4740_p7 = pnand %p4739_p6, %p4733_p3 }
  0x12   :  { %4743 = shalt.err (!%p4740_p7)
}
  0x13   :  { %s4909_s15 = smov 256   ;;  %s4910_s16 = smov 16  }
  0x14   :  { %39 = dma.hbm_to_vmem [thread:$0]  %s5162_s1, 25088, %s34_s28, [#allocation6], %s4909_s15, %s4909_s15, %s4910_s16  }
  0x15   :  { %s4911_s19 = smov [#allocation8]   ;;  %s4744_s23 = scalar_lea.hbm %s5164_s3, 4096 }
  0x16   :  { %s57_s20 = sshll.u32 %s4911_s19, 4  ;;  %p4745_p8 = scmp.ne.s32.totalorder %s5164_s3, %s4744_s23  ;;  %s58_s20 = int_to_ptr.vmem [resolvable:$true] %s57_s20 }
  0x17   :  { %p4748_p9 = scmp.lt.u32.totalorder %s4744_s23, %s5164_s3 }
  0x19   :  { %p4750_p10 = pnand %p4748_p9, %p4745_p8 }
  0x1b   :  { %4753 = shalt.err (!%p4750_p10)
}
  0x1c   :  { %s4754_s29 = scalar_lea.vmem %s58_s20, 4096  ;;  %p4759_p12 = scmp.lt.s32.totalorder %s58_s20, %s58_s20 }
  0x1d   :  { %p4755_p11 = scmp.ne.s32.totalorder %s58_s20, %s4754_s29  ;;  %p4760_p13 = scmp.lt.s32.totalorder %s4754_s29, %s4754_s29 }
  0x1f   :  { %p4761_p0 = por %p4760_p13, %p4759_p12 }
  0x21   :  { %p4762_p1 = pnand %p4761_p0, %p4755_p11 }
  0x23   :  { %4765 = shalt.err (!%p4762_p1)
}
  0x24   :  { %s4912_s1 = smov 64   ;;  %s4913_s28 = smov 4  }
  0x25   :  { %63 = dma.hbm_to_vmem [thread:$0]  %s5164_s3, 4096, %s58_s20, [#allocation9], %s4912_s1, %s4912_s1, %s4913_s28  }
  0x26   :  { %s4914_s10 = smov [#allocation11]   ;;  %s4915_s12 = smov [#allocation2]  }
  0x27   :  { %s81_s11 = sshll.u32 %s4914_s10, 4  ;;  %s24_s13 = sshll.u32 %s4915_s12, 4  ;;  %s82_s11 = int_to_ptr.vmem [resolvable:$true] %s81_s11  ;;  %s25_s13 = int_to_ptr.vmem [resolvable:$true] %s24_s13 }
  0x28   :  { %s4766_s18 = scalar_lea.hbm %s5166_s5, 4096 }
  0x29   :  { %p4767_p2 = scmp.ne.s32.totalorder %s5166_s5, %s4766_s18  ;;  %p4770_p3 = scmp.lt.u32.totalorder %s4766_s18, %s5166_s5 }
  0x2b   :  { %p4772_p4 = pnand %p4770_p3, %p4767_p2 }
  0x2d   :  { %4775 = shalt.err (!%p4772_p4)
}
  0x2e   :  { %s4776_s3 = scalar_lea.vmem %s82_s11, 4096  ;;  %p4781_p6 = scmp.lt.s32.totalorder %s82_s11, %s82_s11 }
  0x2f   :  { %p4777_p5 = scmp.ne.s32.totalorder %s82_s11, %s4776_s3  ;;  %p4782_p7 = scmp.lt.s32.totalorder %s4776_s3, %s4776_s3 }
  0x31   :  { %p4783_p8 = por %p4782_p7, %p4781_p6 }
  0x33   :  { %p4784_p9 = pnand %p4783_p8, %p4777_p5 }
  0x35   :  { %4787 = shalt.err (!%p4784_p9)
}
  0x36   :  { %87 = dma.hbm_to_vmem [thread:$0]  %s5166_s5, 4096, %s82_s11, [#allocation12], %s4912_s1, %s4912_s1, %s4913_s28  }
  0x37   :  { %s4788_s27 = scalar_lea.hbm %s5161_s0, 896 }
  0x38   :  { %p4789_p10 = scmp.ne.s32.totalorder %s5161_s0, %s4788_s27  ;;  %p4792_p11 = scmp.lt.u32.totalorder %s4788_s27, %s5161_s0 }
  0x3a   :  { %p4794_p12 = pnand %p4792_p11, %p4789_p10 }
  0x3c   :  { %4797 = shalt.err (!%p4794_p12)
}
  0x3d   :  { %s4798_s12 = scalar_lea.vmem %s25_s13, 896  ;;  %p4803_p0 = scmp.lt.s32.totalorder %s25_s13, %s25_s13 }
  0x3e   :  { %p4799_p13 = scmp.ne.s32.totalorder %s25_s13, %s4798_s12  ;;  %p4804_p1 = scmp.lt.s32.totalorder %s4798_s12, %s4798_s12 }
  0x40   :  { %p4805_p2 = por %p4804_p1, %p4803_p0 }
  0x42   :  { %p4806_p3 = pnand %p4805_p2, %p4799_p13 }
  0x44   :  { %4809 = shalt.err (!%p4806_p3)
}
  0x45   :  { %27 = dma.hbm_to_vmem [thread:$0]  %s5161_s0, 896, %s25_s13, [#allocation3]  }
  0x46   :  { %s4916_s14 = smov [#allocation7]   ;;  %s4917_s18 = smov [#allocation10]  }
  0x47   :  { %s45_s17 = sshll.u32 %s4916_s14, 4  ;;  %s69_s19 = sshll.u32 %s4917_s18, 4  ;;  %s46_s17 = int_to_ptr.vmem [resolvable:$true] %s45_s17  ;;  %s5023_s19 = int_to_ptr.vmem [resolvable:$true] %s69_s19 }
  0x48   :  { %s4810_s23 = scalar_lea.hbm %s5163_s2, 8192 }
  0x49   :  { %p4811_p4 = scmp.ne.s32.totalorder %s5163_s2, %s4810_s23  ;;  %p4814_p5 = scmp.lt.u32.totalorder %s4810_s23, %s5163_s2 }
  0x4b   :  { %p4816_p6 = pnand %p4814_p5, %p4811_p4 }
  0x4d   :  { %4819 = shalt.err (!%p4816_p6)
}
  0x4e   :  { %s4820_s0 = scalar_lea.vmem %s46_s17, 8192  ;;  %p4825_p8 = scmp.lt.s32.totalorder %s46_s17, %s46_s17 }
  0x4f   :  { %p4821_p7 = scmp.ne.s32.totalorder %s46_s17, %s4820_s0  ;;  %p4826_p9 = scmp.lt.s32.totalorder %s4820_s0, %s4820_s0 }
  0x51   :  { %p4827_p10 = por %p4826_p9, %p4825_p8 }
  0x53   :  { %p4828_p11 = pnand %p4827_p10, %p4821_p7 }
  0x55   :  { %4831 = shalt.err (!%p4828_p11)
}
  0x56   :  { %51 = dma.hbm_to_vmem [thread:$0]  %s5163_s2, 8192, %s46_s17, [#allocation6], %s4909_s15, %s4909_s15, %s4910_s16  }
  0x57   :  { %s4832_s30 = scalar_lea.hbm %s5165_s4, 8192 }
  0x58   :  { %p4833_p12 = scmp.ne.s32.totalorder %s5165_s4, %s4832_s30  ;;  %p4836_p13 = scmp.lt.u32.totalorder %s4832_s30, %s5165_s4 }
  0x5a   :  { %p4838_p0 = pnand %p4836_p13, %p4833_p12 }
  0x5c   :  { %4841 = shalt.err (!%p4838_p0)
}
  0x5d   :  { %s4842_s11 = scalar_lea.vmem %s5023_s19, 8192  ;;  %p4847_p2 = scmp.lt.s32.totalorder %s5023_s19, %s5023_s19 }
  0x5e   :  { %p4843_p1 = scmp.ne.s32.totalorder %s5023_s19, %s4842_s11  ;;  %p4848_p3 = scmp.lt.s32.totalorder %s4842_s11, %s4842_s11 }
  0x60   :  { %p4849_p4 = por %p4848_p3, %p4847_p2 }
  0x62   :  { %p4850_p5 = pnand %p4849_p4, %p4843_p1 }
  0x64   :  { %4853 = shalt.err (!%p4850_p5)
}
  0x65   :  { %75 = dma.hbm_to_vmem [thread:$0]  %s5165_s4, 8192, %s5023_s19, [#allocation9], %s4909_s15, %s4909_s15, %s4910_s16  }
  0x66   :  { %s4918_s17 = smov [#allocation13]   ;;  %s4854_s23 = scalar_lea.hbm %s5167_s6, 2048 }
  0x67   :  { %s93_s18 = sshll.u32 %s4918_s17, 4  ;;  %p4855_p6 = scmp.ne.s32.totalorder %s5167_s6, %s4854_s23  ;;  %s94_s18 = int_to_ptr.vmem [resolvable:$true] %s93_s18 }
  0x68   :  { %p4858_p7 = scmp.lt.u32.totalorder %s4854_s23, %s5167_s6 }
  0x6a   :  { %p4860_p8 = pnand %p4858_p7, %p4855_p6 }
  0x6c   :  { %4863 = shalt.err (!%p4860_p8)
}
  0x6d   :  { %s4864_s0 = scalar_lea.vmem %s94_s18, 2048  ;;  %p4869_p10 = scmp.lt.s32.totalorder %s94_s18, %s94_s18 }
  0x6e   :  { %p4865_p9 = scmp.ne.s32.totalorder %s94_s18, %s4864_s0  ;;  %p4870_p11 = scmp.lt.s32.totalorder %s4864_s0, %s4864_s0 }
  0x70   :  { %p4871_p12 = por %p4870_p11, %p4869_p10 }
  0x72   :  { %p4872_p13 = pnand %p4871_p12, %p4865_p9 }
  0x74   :  { %4875 = shalt.err (!%p4872_p13)
}
  0x75   :  { %99 = dma.hbm_to_vmem [thread:$0]  %s5167_s6, 2048, %s94_s18, [#allocation12], %s4912_s1, %s4912_s1, %s4913_s28  }
  0x76   :  { %4898 = dma.done.wait [#allocation3], 896  }
  0x77   :  { %4899 = vsyncadd [#allocation3], 4294966400 }
  0x78   :  { %4900 = dma.done.wait [#allocation6], 33280  }
  0x79   :  { %4901 = vsyncadd [#allocation6], 4294934016 }
  0x7a   :  { %4902 = dma.done.wait [#allocation9], 12288  }
  0x7b   :  { %4903 = vsyncadd [#allocation9], 4294955008 }
  0x7c   :  { %4904 = dma.done.wait [#allocation12], 6144  }
  0x7d   :  { %4905 = vsyncadd [#allocation12], 4294961152  ;;  %v4919_v0 = vmov 0   ;;  %v4124_v1 = vld [vmem:[#allocation5 + $0x4] ss:$16 sps:$4 sm:$0xff]   ;;  %v130_v12 = vld [vmem:[#allocation2 + $0x30] sm:$0xff] }
  0x7e   :  { %1495 = vmatprep.mubr.bf16.mxu1 %v4919_v0  ;;  %v4126_v2 = vld [vmem:[#allocation5] ss:$16 sps:$4 sm:$0xff]   ;;  %1340 = vmatprep.subr.bf16.mxu0 %v4124_v1  ;;  %v4127_v3 = vld [vmem:[#allocation5 + $0x24] ss:$16 sps:$4 sm:$0xff]   ;;  %v4141_v9 = vld [vmem:[#allocation5 + $0xc] ss:$16 sps:$4 sm:$0xff]   ;;  %v5076_v13 = vpack.c.bf16 %v130_v12, %v130_v12 }
  0x7f   :  { %1341 = vmatpush1.bf16.msra.mxu0 %v4126_v2  ;;  %v4129_v4 = vld [vmem:[#allocation5 + $0x20] ss:$16 sps:$4 sm:$0xff]   ;;  %v4130_v5 = vld [vmem:[#allocation5 + $0x44] ss:$16 sps:$4 sm:$0xff]   ;;  %v4139_v11 = vld [vmem:[#allocation5 + $0x8] ss:$16 sps:$4 sm:$0xff]  }
  0x80   :  { %1342 = vmatprep.subr.bf16.mxu0 %v4127_v3  ;;  %v4133_v6 = vld [vmem:[#allocation5 + $0x604] ss:$16 sps:$4 sm:$0xff]   ;;  %v4137_v7 = vld [vmem:[#allocation5 + $0x600] ss:$16 sps:$4 sm:$0xff]   ;;  %vm1336_vm0 = vcmask 130048   ;;  %v124_v3 = vld [vmem:[#allocation2] sm:$0xff] }
  0x81   :  { %1463 = vmatprep.subr.bf16.mxu1 %v4133_v6  ;;  %v4132_v8 = vld [vmem:[#allocation5 + $0x40] ss:$16 sps:$4 sm:$0xff]   ;;  %v4135_v10 = vld [vmem:[#allocation5 + $0x64] ss:$16 sps:$4 sm:$0xff]   ;;  %v4147_v14 = vld [vmem:[#allocation5 + $0x2c] ss:$16 sps:$4 sm:$0xff]   ;;  %v131_v6 = vpack.c.bf16 %v124_v3, %v124_v3 }
  0x82   :  { %1464 = vmatpush1.bf16.msra.mxu1 %v4137_v7  ;;  %v4138_v15 = vld [vmem:[#allocation5 + $0x60] ss:$16 sps:$4 sm:$0xff]   ;;  %v4142_v16 = vld [vmem:[#allocation5 + $0x84] ss:$16 sps:$4 sm:$0xff]   ;;  %v4145_v17 = vld [vmem:[#allocation5 + $0x28] ss:$16 sps:$4 sm:$0xff]  }
  0x83   :  { %1343 = vmatpush1.bf16.msra.mxu0 %v4129_v4  ;;  %1504 = vmatprep.subr.bf16.mxu1 %v4141_v9  ;;  %v4153_v18 = vld [vmem:[#allocation5 + $0x4c] ss:$16 sps:$4 sm:$0xff]   ;;  %v4144_v19 = vld [vmem:[#allocation5 + $0x80] ss:$16 sps:$4 sm:$0xff]   ;;  %v4148_v20 = vld [vmem:[#allocation5 + $0xa4] ss:$16 sps:$4 sm:$0xff]  }
  0x84   :  { %1344 = vmatprep.subr.bf16.mxu0 %v4130_v5  ;;  %v4151_v21 = vld [vmem:[#allocation5 + $0x48] ss:$16 sps:$4 sm:$0xff]   ;;  %v4159_v22 = vld [vmem:[#allocation5 + $0x6c] ss:$16 sps:$4 sm:$0xff]   ;;  %v4150_v23 = vld [vmem:[#allocation5 + $0xa0] ss:$16 sps:$4 sm:$0xff]  }
  0x85   :  { %3762 = vmatmul.mubr.msk.bf16.vlgmr.msra.gmra.mrb[0].mxu1 %vm1336_vm0, %v5076_v13  ;;  %v4154_v24 = vld [vmem:[#allocation5 + $0xc4] ss:$16 sps:$4 sm:$0xff]   ;;  %v4157_v25 = vld [vmem:[#allocation5 + $0x68] ss:$16 sps:$4 sm:$0xff]   ;;  %v4165_v26 = vld [vmem:[#allocation5 + $0x8c] ss:$16 sps:$4 sm:$0xff]  }
  0x86   :  { %1505 = vmatpush1.bf16.msra.mxu1 %v4139_v11  ;;  %v4156_v27 = vld [vmem:[#allocation5 + $0xc0] ss:$16 sps:$4 sm:$0xff]   ;;  %v4160_v28 = vld [vmem:[#allocation5 + $0xe4] ss:$16 sps:$4 sm:$0xff]   ;;  %v4163_v29 = vld [vmem:[#allocation5 + $0x88] ss:$16 sps:$4 sm:$0xff]  }
  0x87   :  { %1345 = vmatpush1.bf16.msra.mxu0 %v4132_v8  ;;  %1506 = vmatprep.subr.bf16.mxu1 %v4147_v14  ;;  %v4171_v30 = vld [vmem:[#allocation5 + $0xac] ss:$16 sps:$4 sm:$0xff]   ;;  %v4162_v31 = vld [vmem:[#allocation5 + $0xe0] ss:$16 sps:$4 sm:$0xff]   ;;  %v4166_v32 = vld [vmem:[#allocation5 + $0x104] ss:$16 sps:$4 sm:$0xff]  }
  0x88   :  { %1346 = vmatprep.subr.bf16.mxu0 %v4135_v10  ;;  %v4169_v33 = vld [vmem:[#allocation5 + $0xa8] ss:$16 sps:$4 sm:$0xff]   ;;  %v4177_v34 = vld [vmem:[#allocation5 + $0xcc] ss:$16 sps:$4 sm:$0xff]   ;;  %v4168_v35 = vld [vmem:[#allocation5 + $0x100] ss:$16 sps:$4 sm:$0xff]  }
  0x89   :  { %v4172_v36 = vld [vmem:[#allocation5 + $0x124] ss:$16 sps:$4 sm:$0xff]   ;;  %v4175_v37 = vld [vmem:[#allocation5 + $0xc8] ss:$16 sps:$4 sm:$0xff]   ;;  %v4183_v38 = vld [vmem:[#allocation5 + $0xec] ss:$16 sps:$4 sm:$0xff]  }
  0x8a   :  { %1507 = vmatpush1.bf16.msra.mxu1 %v4145_v17  ;;  %v4174_v39 = vld [vmem:[#allocation5 + $0x120] ss:$16 sps:$4 sm:$0xff]   ;;  %v4178_v40 = vld [vmem:[#allocation5 + $0x144] ss:$16 sps:$4 sm:$0xff]   ;;  %v4181_v41 = vld [vmem:[#allocation5 + $0xe8] ss:$16 sps:$4 sm:$0xff]  }
  0x8b   :  { %1347 = vmatpush1.bf16.msra.mxu0 %v4138_v15  ;;  %1508 = vmatprep.subr.bf16.mxu1 %v4153_v18  ;;  %v4189_v42 = vld [vmem:[#allocation5 + $0x10c] ss:$16 sps:$4 sm:$0xff]   ;;  %v4180_v43 = vld [vmem:[#allocation5 + $0x140] ss:$16 sps:$4 sm:$0xff]   ;;  %v4184_v44 = vld [vmem:[#allocation5 + $0x164] ss:$16 sps:$4 sm:$0xff]  }
  0x8c   :  { %1348 = vmatprep.subr.bf16.mxu0 %v4142_v16  ;;  %v125_v45 = vld [vmem:[#allocation2 + $0x8] sm:$0xff]  ;;  %v4187_v46 = vld [vmem:[#allocation5 + $0x108] ss:$16 sps:$4 sm:$0xff]   ;;  %v4195_v48 = vld [vmem:[#allocation5 + $0x12c] ss:$16 sps:$4 sm:$0xff]   ;;  %s4920_s12 = smov [#allocation14]  }
  0x8d   :  { %v132_v47 = vpack.c.bf16 %v125_v45, %v125_v45  ;;  %v4186_v49 = vld [vmem:[#allocation5 + $0x160] ss:$16 sps:$4 sm:$0xff]   ;;  %v4190_v50 = vld [vmem:[#allocation5 + $0x184] ss:$16 sps:$4 sm:$0xff]   ;;  %v4193_v51 = vld [vmem:[#allocation5 + $0x128] ss:$16 sps:$4 sm:$0xff]  }
  0x8e   :  { %1509 = vmatpush1.bf16.msra.mxu1 %v4151_v21  ;;  %v4201_v52 = vld [vmem:[#allocation5 + $0x14c] ss:$16 sps:$4 sm:$0xff]   ;;  %v4192_v53 = vld [vmem:[#allocation5 + $0x180] ss:$16 sps:$4 sm:$0xff]   ;;  %v4196_v54 = vld [vmem:[#allocation5 + $0x1a4] ss:$16 sps:$4 sm:$0xff]  }
  0x8f   :  { %1349 = vmatpush1.bf16.msra.mxu0 %v4144_v19  ;;  %1510 = vmatprep.subr.bf16.mxu1 %v4159_v22  ;;  %v4199_v55 = vld [vmem:[#allocation5 + $0x148] ss:$16 sps:$4 sm:$0xff]   ;;  %v4207_v56 = vld [vmem:[#allocation5 + $0x16c] ss:$16 sps:$4 sm:$0xff]   ;;  %v4198_v57 = vld [vmem:[#allocation5 + $0x1a0] ss:$16 sps:$4 sm:$0xff]  }
  0x90   :  { %1350 = vmatprep.subr.bf16.mxu0 %v4148_v20  ;;  %1372 = vmatprep.mubr.bf16.mxu0 %v132_v47  ;;  %v4202_v58 = vld [vmem:[#allocation5 + $0x1c4] ss:$16 sps:$4 sm:$0xff]   ;;  %v4205_v59 = vld [vmem:[#allocation5 + $0x168] ss:$16 sps:$4 sm:$0xff]   ;;  %v4213_v60 = vld [vmem:[#allocation5 + $0x18c] ss:$16 sps:$4 sm:$0xff]  }
  0x91   :  { %1536 = vmatprep.mubr.bf16.mxu1 %v132_v47  ;;  %v4204_v61 = vld [vmem:[#allocation5 + $0x1c0] ss:$16 sps:$4 sm:$0xff]   ;;  %v4208_v62 = vld [vmem:[#allocation5 + $0x1e4] ss:$16 sps:$4 sm:$0xff]   ;;  %v4211_v63 = vld [vmem:[#allocation5 + $0x188] ss:$16 sps:$4 sm:$0xff]  }
  0x92   :  { %1511 = vmatpush1.bf16.msra.mxu1 %v4157_v25  ;;  %v4219_v1 = vld [vmem:[#allocation5 + $0x1ac] ss:$16 sps:$4 sm:$0xff]   ;;  %v4210_v2 = vld [vmem:[#allocation5 + $0x1e0] ss:$16 sps:$4 sm:$0xff]   ;;  %v4216_v4 = vld [vmem:[#allocation5 + $0x204] ss:$16 sps:$4 sm:$0xff]  }
  0x93   :  { %1351 = vmatpush1.bf16.msra.mxu0 %v4150_v23  ;;  %1512 = vmatprep.subr.bf16.mxu1 %v4165_v26  ;;  %v4217_v5 = vld [vmem:[#allocation5 + $0x1a8] ss:$16 sps:$4 sm:$0xff]   ;;  %v4225_v7 = vld [vmem:[#allocation5 + $0x1cc] ss:$16 sps:$4 sm:$0xff]   ;;  %v4214_v8 = vld [vmem:[#allocation5 + $0x200] ss:$16 sps:$4 sm:$0xff]  }
  0x94   :  { %1352 = vmatprep.subr.bf16.mxu0 %v4154_v24  ;;  %v4222_v9 = vld [vmem:[#allocation5 + $0x224] ss:$16 sps:$4 sm:$0xff]   ;;  %v4223_v10 = vld [vmem:[#allocation5 + $0x1c8] ss:$16 sps:$4 sm:$0xff]   ;;  %v4231_v11 = vld [vmem:[#allocation5 + $0x1ec] ss:$16 sps:$4 sm:$0xff]  }
  0x95   :  { %v4220_v12 = vld [vmem:[#allocation5 + $0x220] ss:$16 sps:$4 sm:$0xff]   ;;  %v4228_v14 = vld [vmem:[#allocation5 + $0x244] ss:$16 sps:$4 sm:$0xff]   ;;  %v4229_v15 = vld [vmem:[#allocation5 + $0x1e8] ss:$16 sps:$4 sm:$0xff]  }
  0x96   :  { %1513 = vmatpush1.bf16.msra.mxu1 %v4163_v29  ;;  %v4237_v16 = vld [vmem:[#allocation5 + $0x20c] ss:$16 sps:$4 sm:$0xff]   ;;  %v4226_v17 = vld [vmem:[#allocation5 + $0x240] ss:$16 sps:$4 sm:$0xff]   ;;  %v4234_v18 = vld [vmem:[#allocation5 + $0x264] ss:$16 sps:$4 sm:$0xff]  }
  0x97   :  { %1353 = vmatpush1.bf16.msra.mxu0 %v4156_v27  ;;  %1514 = vmatprep.subr.bf16.mxu1 %v4171_v30  ;;  %v4235_v19 = vld [vmem:[#allocation5 + $0x208] ss:$16 sps:$4 sm:$0xff]   ;;  %v4243_v20 = vld [vmem:[#allocation5 + $0x22c] ss:$16 sps:$4 sm:$0xff]   ;;  %v4232_v21 = vld [vmem:[#allocation5 + $0x260] ss:$16 sps:$4 sm:$0xff]  }
  0x98   :  { %1354 = vmatprep.subr.bf16.mxu0 %v4160_v28  ;;  %v4240_v22 = vld [vmem:[#allocation5 + $0x284] ss:$16 sps:$4 sm:$0xff]   ;;  %v4241_v23 = vld [vmem:[#allocation5 + $0x228] ss:$16 sps:$4 sm:$0xff]   ;;  %v4249_v24 = vld [vmem:[#allocation5 + $0x24c] ss:$16 sps:$4 sm:$0xff]  }
  0x99   :  { %v4238_v25 = vld [vmem:[#allocation5 + $0x280] ss:$16 sps:$4 sm:$0xff]   ;;  %v4246_v26 = vld [vmem:[#allocation5 + $0x2a4] ss:$16 sps:$4 sm:$0xff]   ;;  %v4247_v27 = vld [vmem:[#allocation5 + $0x248] ss:$16 sps:$4 sm:$0xff]  }
  0x9a   :  { %1515 = vmatpush1.bf16.msra.mxu1 %v4169_v33  ;;  %v4255_v28 = vld [vmem:[#allocation5 + $0x26c] ss:$16 sps:$4 sm:$0xff]   ;;  %v4244_v29 = vld [vmem:[#allocation5 + $0x2a0] ss:$16 sps:$4 sm:$0xff]   ;;  %v4253_v33 = vld [vmem:[#allocation5 + $0x268] ss:$16 sps:$4 sm:$0xff]  }
  0x9b   :  { %1355 = vmatpush1.bf16.msra.mxu0 %v4162_v31  ;;  %1516 = vmatprep.subr.bf16.mxu1 %v4177_v34  ;;  %v127_v30 = vld [vmem:[#allocation2 + $0x18] sm:$0xff]  ;;  %v4261_v34 = vld [vmem:[#allocation5 + $0x28c] ss:$16 sps:$4 sm:$0xff]   ;;  %v4271_v45 = vld [vmem:[#allocation5 + $0x2c8] ss:$16 sps:$4 sm:$0xff]   ;;  %s3554_s5 = sshll.u32 %s4920_s12, 4  ;;  %s3555_s5 = int_to_ptr.vmem [resolvable:$true] %s3554_s5 }
  0x9c   :  { %1356 = vmatprep.subr.bf16.mxu0 %v4166_v32  ;;  %v4252_v31 = vld [vmem:[#allocation5 + $0x2c4] ss:$16 sps:$4 sm:$0xff]   ;;  %v134_v32 = vpack.c.bf16 %v127_v30, %v127_v30  ;;  %v4268_v47 = vld [vmem:[#allocation5 + $0x320] ss:$16 sps:$4 sm:$0xff]   ;;  %v4309_v3 = vld [vmem:[#allocation5 + $0x38c] ss:$16 sps:$4 sm:$0xff]   ;;  %p4881_p1 = scmp.lt.s32.totalorder %s3555_s5, %s3555_s5 }
  0x9d   :  { %v4336_v30 = vld [vmem:[#allocation5 + $0x484] ss:$16 sps:$4 sm:$0xff]  }
  0x9e   :  { %1517 = vmatpush1.bf16.msra.mxu1 %v4175_v37  ;;  %v4259_v37 = vld [vmem:[#allocation5 + $0x288] ss:$16 sps:$4 sm:$0xff]  }
  0x9f   :  { %1357 = vmatpush1.bf16.msra.mxu0 %v4168_v35  ;;  %1518 = vmatprep.subr.bf16.mxu1 %v4183_v38  ;;  %v4250_v35 = vld [vmem:[#allocation5 + $0x2c0] ss:$16 sps:$4 sm:$0xff]   ;;  %v4267_v38 = vld [vmem:[#allocation5 + $0x2ac] ss:$16 sps:$4 sm:$0xff]  }
  0xa0   :  { %1358 = vmatprep.subr.bf16.mxu0 %v4172_v36  ;;  %v4258_v36 = vld [vmem:[#allocation5 + $0x2e4] ss:$16 sps:$4 sm:$0xff]  }
  0xa2   :  { %1519 = vmatpush1.bf16.msra.mxu1 %v4181_v41  ;;  %v4265_v41 = vld [vmem:[#allocation5 + $0x2a8] ss:$16 sps:$4 sm:$0xff]  }
  0xa3   :  { %1359 = vmatpush1.bf16.msra.mxu0 %v4174_v39  ;;  %1520 = vmatprep.subr.bf16.mxu1 %v4189_v42  ;;  %v4256_v39 = vld [vmem:[#allocation5 + $0x2e0] ss:$16 sps:$4 sm:$0xff]   ;;  %v4273_v42 = vld [vmem:[#allocation5 + $0x2cc] ss:$16 sps:$4 sm:$0xff]  }
  0xa4   :  { %1360 = vmatprep.subr.bf16.mxu0 %v4178_v40  ;;  %v4264_v40 = vld [vmem:[#allocation5 + $0x304] ss:$16 sps:$4 sm:$0xff]  }
  0xa6   :  { %1521 = vmatpush1.bf16.msra.mxu1 %v4187_v46  ;;  %v4279_v46 = vld [vmem:[#allocation5 + $0x2ec] ss:$16 sps:$4 sm:$0xff]  }
  0xa7   :  { %1361 = vmatpush1.bf16.msra.mxu0 %v4180_v43  ;;  %1522 = vmatprep.subr.bf16.mxu1 %v4195_v48  ;;  %v4262_v43 = vld [vmem:[#allocation5 + $0x300] ss:$16 sps:$4 sm:$0xff]   ;;  %v4276_v48 = vld [vmem:[#allocation5 + $0x344] ss:$16 sps:$4 sm:$0xff]  }
  0xa8   :  { %1362 = vmatprep.subr.bf16.mxu0 %v4184_v44  ;;  %v4270_v44 = vld [vmem:[#allocation5 + $0x324] ss:$16 sps:$4 sm:$0xff]  }
  0xaa   :  { %1523 = vmatpush1.bf16.msra.mxu1 %v4193_v51  ;;  %v4274_v51 = vld [vmem:[#allocation5 + $0x340] ss:$16 sps:$4 sm:$0xff]  }
  0xab   :  { %1363 = vmatpush1.bf16.msra.mxu0 %v4186_v49  ;;  %1524 = vmatprep.subr.bf16.mxu1 %v4201_v52  ;;  %v4277_v49 = vld [vmem:[#allocation5 + $0x2e8] ss:$16 sps:$4 sm:$0xff]   ;;  %v4282_v52 = vld [vmem:[#allocation5 + $0x364] ss:$16 sps:$4 sm:$0xff]  }
  0xac   :  { %1364 = vmatprep.subr.bf16.mxu0 %v4190_v50  ;;  %v4285_v50 = vld [vmem:[#allocation5 + $0x30c] ss:$16 sps:$4 sm:$0xff]  }
  0xae   :  { %1525 = vmatpush1.bf16.msra.mxu1 %v4199_v55  ;;  %v4280_v55 = vld [vmem:[#allocation5 + $0x360] ss:$16 sps:$4 sm:$0xff]  }
  0xaf   :  { %1365 = vmatpush1.bf16.msra.mxu0 %v4192_v53  ;;  %1526 = vmatprep.subr.bf16.mxu1 %v4207_v56  ;;  %v4283_v53 = vld [vmem:[#allocation5 + $0x308] ss:$16 sps:$4 sm:$0xff]   ;;  %v4288_v56 = vld [vmem:[#allocation5 + $0x384] ss:$16 sps:$4 sm:$0xff]  }
  0xb0   :  { %1366 = vmatprep.subr.bf16.mxu0 %v4196_v54  ;;  %v4291_v54 = vld [vmem:[#allocation5 + $0x32c] ss:$16 sps:$4 sm:$0xff]  }
  0xb2   :  { %1527 = vmatpush1.bf16.msra.mxu1 %v4205_v59  ;;  %v4286_v59 = vld [vmem:[#allocation5 + $0x380] ss:$16 sps:$4 sm:$0xff]  }
  0xb3   :  { %1367 = vmatpush1.bf16.msra.mxu0 %v4198_v57  ;;  %1528 = vmatprep.subr.bf16.mxu1 %v4213_v60  ;;  %v4289_v57 = vld [vmem:[#allocation5 + $0x328] ss:$16 sps:$4 sm:$0xff]   ;;  %v4294_v60 = vld [vmem:[#allocation5 + $0x3a4] ss:$16 sps:$4 sm:$0xff]  }
  0xb4   :  { %1368 = vmatprep.subr.bf16.mxu0 %v4202_v58  ;;  %v4297_v58 = vld [vmem:[#allocation5 + $0x34c] ss:$16 sps:$4 sm:$0xff]  }
  0xb6   :  { %1529 = vmatpush1.bf16.msra.mxu1 %v4211_v63  ;;  %v4292_v63 = vld [vmem:[#allocation5 + $0x3a0] ss:$16 sps:$4 sm:$0xff]  }
  0xb7   :  { %1369 = vmatpush1.bf16.msra.mxu0 %v4204_v61  ;;  %1530 = vmatprep.subr.bf16.mxu1 %v4219_v1  ;;  %v4295_v61 = vld [vmem:[#allocation5 + $0x348] ss:$16 sps:$4 sm:$0xff]   ;;  %v4300_v1 = vld [vmem:[#allocation5 + $0x3c4] ss:$16 sps:$4 sm:$0xff]  }
  0xb8   :  { %1370 = vmatprep.subr.bf16.mxu0 %v4208_v62  ;;  %v4303_v62 = vld [vmem:[#allocation5 + $0x36c] ss:$16 sps:$4 sm:$0xff]  }
  0xba   :  { %1531 = vmatpush1.bf16.msra.mxu1 %v4217_v5  ;;  %v4306_v5 = vld [vmem:[#allocation5 + $0x3e4] ss:$16 sps:$4 sm:$0xff]  }
  0xbb   :  { %1371 = vmatpush1.bf16.msra.mxu0 %v4210_v2  ;;  %1532 = vmatprep.subr.bf16.mxu1 %v4225_v7  ;;  %v4301_v2 = vld [vmem:[#allocation5 + $0x368] ss:$16 sps:$4 sm:$0xff]   ;;  %v4304_v7 = vld [vmem:[#allocation5 + $0x3e0] ss:$16 sps:$4 sm:$0xff]  }
  0xbc   :  { %1381 = vmatprep.subr.bf16.mxu0 %v4216_v4  ;;  %v4298_v4 = vld [vmem:[#allocation5 + $0x3c0] ss:$16 sps:$4 sm:$0xff]  }
  0xbe   :  { %1373 = vmatmul.mubr.bf16.vlgmr.msra.gmra.mrb[0].mxu0 %v131_v6  ;;  %1533 = vmatpush1.bf16.msra.mxu1 %v4223_v10  ;;  %v4312_v10 = vld [vmem:[#allocation5 + $0x404] ss:$16 sps:$4 sm:$0xff]  }
  0xbf   :  { %1382 = vmatpush1.bf16.msra.mxu0 %v4214_v8  ;;  %1534 = vmatprep.subr.bf16.mxu1 %v4231_v11  ;;  %v4315_v8 = vld [vmem:[#allocation5 + $0x3ac] ss:$16 sps:$4 sm:$0xff]   ;;  %v4313_v11 = vld [vmem:[#allocation5 + $0x3a8] ss:$16 sps:$4 sm:$0xff]  }
  0xc0   :  { %1383 = vmatprep.subr.bf16.mxu0 %v4222_v9  ;;  %1413 = vmatprep.mubr.bf16.mxu0 %v134_v32  ;;  %v126_v9 = vld [vmem:[#allocation2 + $0x10] sm:$0xff] }
  0xc2   :  { %1535 = vmatpush1.bf16.msra.mxu1 %v4229_v15  ;;  %v4321_v15 = vld [vmem:[#allocation5 + $0x3cc] ss:$16 sps:$4 sm:$0xff]  }
  0xc3   :  { %1384 = vmatpush1.bf16.msra.mxu0 %v4220_v12  ;;  %1545 = vmatprep.subr.bf16.mxu1 %v4237_v16  ;;  %v129_v12 = vld [vmem:[#allocation2 + $0x28] sm:$0xff] }
  0xc4   :  { %1385 = vmatprep.subr.bf16.mxu0 %v4228_v14  ;;  %v133_v14 = vpack.c.bf16 %v126_v9, %v126_v9  ;;  %v4310_v16 = vld [vmem:[#allocation5 + $0x400] ss:$16 sps:$4 sm:$0xff]   ;;  %v4405_v9 = vld [vmem:[#allocation5 + $0x58c] ss:$16 sps:$4 sm:$0xff]  }
  0xc5   :  { %1537 = vmatmul.mubr.bf16.vlgmr.msra.gmra.mrb[4].mxu1 %v131_v6  ;;  %v4307_v6 = vld [vmem:[#allocation5 + $0x388] ss:$16 sps:$4 sm:$0xff]  }
  0xc6   :  { %1546 = vmatpush1.bf16.msra.mxu1 %v4235_v19  ;;  %1577 = vmatprep.mubr.bf16.mxu1 %v134_v32  ;;  %v4319_v19 = vld [vmem:[#allocation5 + $0x3c8] ss:$16 sps:$4 sm:$0xff]   ;;  %v4345_v32 = vld [vmem:[#allocation5 + $0x44c] ss:$16 sps:$4 sm:$0xff]  }
  0xc7   :  { %1386 = vmatpush1.bf16.msra.mxu0 %v4226_v17  ;;  %1547 = vmatprep.subr.bf16.mxu1 %v4243_v20  ;;  %v136_v17 = vpack.c.bf16 %v129_v12, %v129_v12  ;;  %v4327_v20 = vld [vmem:[#allocation5 + $0x3ec] ss:$16 sps:$4 sm:$0xff]   ;;  %v4403_v12 = vld [vmem:[#allocation5 + $0x588] ss:$16 sps:$4 sm:$0xff]  }
  0xc8   :  { %1387 = vmatprep.subr.bf16.mxu0 %v4234_v18  ;;  %v4318_v18 = vld [vmem:[#allocation5 + $0x424] ss:$16 sps:$4 sm:$0xff]  }
  0xca   :  { %1548 = vmatpush1.bf16.msra.mxu1 %v4241_v23  ;;  %v4325_v23 = vld [vmem:[#allocation5 + $0x3e8] ss:$16 sps:$4 sm:$0xff]  }
  0xcb   :  { %1388 = vmatpush1.bf16.msra.mxu0 %v4232_v21  ;;  %1549 = vmatprep.subr.bf16.mxu1 %v4249_v24  ;;  %v4316_v21 = vld [vmem:[#allocation5 + $0x420] ss:$16 sps:$4 sm:$0xff]   ;;  %v4333_v24 = vld [vmem:[#allocation5 + $0x40c] ss:$16 sps:$4 sm:$0xff]  }
  0xcc   :  { %1389 = vmatprep.subr.bf16.mxu0 %v4240_v22  ;;  %v4324_v22 = vld [vmem:[#allocation5 + $0x444] ss:$16 sps:$4 sm:$0xff]  }
  0xce   :  { %1550 = vmatpush1.bf16.msra.mxu1 %v4247_v27  ;;  %v4331_v27 = vld [vmem:[#allocation5 + $0x408] ss:$16 sps:$4 sm:$0xff]  }
  0xcf   :  { %1390 = vmatpush1.bf16.msra.mxu0 %v4238_v25  ;;  %1551 = vmatprep.subr.bf16.mxu1 %v4255_v28  ;;  %v4322_v25 = vld [vmem:[#allocation5 + $0x440] ss:$16 sps:$4 sm:$0xff]   ;;  %v4339_v28 = vld [vmem:[#allocation5 + $0x42c] ss:$16 sps:$4 sm:$0xff]  }
  0xd0   :  { %1391 = vmatprep.subr.bf16.mxu0 %v4246_v26  ;;  %v4330_v26 = vld [vmem:[#allocation5 + $0x464] ss:$16 sps:$4 sm:$0xff]  }
  0xd2   :  { %1552 = vmatpush1.bf16.msra.mxu1 %v4253_v33  ;;  %v4334_v33 = vld [vmem:[#allocation5 + $0x480] ss:$16 sps:$4 sm:$0xff]  }
  0xd3   :  { %1392 = vmatpush1.bf16.msra.mxu0 %v4244_v29  ;;  %1553 = vmatprep.subr.bf16.mxu1 %v4261_v34  ;;  %v4328_v29 = vld [vmem:[#allocation5 + $0x460] ss:$16 sps:$4 sm:$0xff]   ;;  %v4342_v34 = vld [vmem:[#allocation5 + $0x4a4] ss:$16 sps:$4 sm:$0xff]  }
  0xd4   :  { %1393 = vmatprep.subr.bf16.mxu0 %v4252_v31  ;;  %v4337_v31 = vld [vmem:[#allocation5 + $0x428] ss:$16 sps:$4 sm:$0xff]  }
  0xd6   :  { %1554 = vmatpush1.bf16.msra.mxu1 %v4259_v37  ;;  %v4340_v37 = vld [vmem:[#allocation5 + $0x4a0] ss:$16 sps:$4 sm:$0xff]  }
  0xd7   :  { %1394 = vmatpush1.bf16.msra.mxu0 %v4250_v35  ;;  %1555 = vmatprep.subr.bf16.mxu1 %v4267_v38  ;;  %v4343_v35 = vld [vmem:[#allocation5 + $0x448] ss:$16 sps:$4 sm:$0xff]   ;;  %v4348_v38 = vld [vmem:[#allocation5 + $0x4c4] ss:$16 sps:$4 sm:$0xff]  }
  0xd8   :  { %1395 = vmatprep.subr.bf16.mxu0 %v4258_v36  ;;  %v4351_v36 = vld [vmem:[#allocation5 + $0x46c] ss:$16 sps:$4 sm:$0xff]  }
  0xda   :  { %1556 = vmatpush1.bf16.msra.mxu1 %v4265_v41  ;;  %v4346_v41 = vld [vmem:[#allocation5 + $0x4c0] ss:$16 sps:$4 sm:$0xff]  }
  0xdb   :  { %1396 = vmatpush1.bf16.msra.mxu0 %v4256_v39  ;;  %1557 = vmatprep.subr.bf16.mxu1 %v4273_v42  ;;  %v4349_v39 = vld [vmem:[#allocation5 + $0x468] ss:$16 sps:$4 sm:$0xff]   ;;  %v4354_v42 = vld [vmem:[#allocation5 + $0x4e4] ss:$16 sps:$4 sm:$0xff]  }
  0xdc   :  { %1397 = vmatprep.subr.bf16.mxu0 %v4264_v40  ;;  %v4357_v40 = vld [vmem:[#allocation5 + $0x48c] ss:$16 sps:$4 sm:$0xff]  }
  0xde   :  { %1558 = vmatpush1.bf16.msra.mxu1 %v4271_v45  ;;  %v4352_v45 = vld [vmem:[#allocation5 + $0x4e0] ss:$16 sps:$4 sm:$0xff]  }
  0xdf   :  { %1398 = vmatpush1.bf16.msra.mxu0 %v4262_v43  ;;  %1559 = vmatprep.subr.bf16.mxu1 %v4279_v46  ;;  %v4355_v43 = vld [vmem:[#allocation5 + $0x488] ss:$16 sps:$4 sm:$0xff]   ;;  %v4360_v46 = vld [vmem:[#allocation5 + $0x504] ss:$16 sps:$4 sm:$0xff]  }
  0xe0   :  { %1399 = vmatprep.subr.bf16.mxu0 %v4270_v44  ;;  %v4363_v44 = vld [vmem:[#allocation5 + $0x4ac] ss:$16 sps:$4 sm:$0xff]  }
  0xe2   :  { %1560 = vmatpush1.bf16.msra.mxu1 %v4277_v49  ;;  %v4358_v49 = vld [vmem:[#allocation5 + $0x500] ss:$16 sps:$4 sm:$0xff]  }
  0xe3   :  { %1400 = vmatpush1.bf16.msra.mxu0 %v4268_v47  ;;  %1561 = vmatprep.subr.bf16.mxu1 %v4285_v50  ;;  %v4361_v47 = vld [vmem:[#allocation5 + $0x4a8] ss:$16 sps:$4 sm:$0xff]   ;;  %v4366_v50 = vld [vmem:[#allocation5 + $0x524] ss:$16 sps:$4 sm:$0xff]  }
  0xe4   :  { %1401 = vmatprep.subr.bf16.mxu0 %v4276_v48  ;;  %v4369_v48 = vld [vmem:[#allocation5 + $0x4cc] ss:$16 sps:$4 sm:$0xff]  }
  0xe6   :  { %1562 = vmatpush1.bf16.msra.mxu1 %v4283_v53  ;;  %v4372_v53 = vld [vmem:[#allocation5 + $0x544] ss:$16 sps:$4 sm:$0xff]  }
  0xe7   :  { %1402 = vmatpush1.bf16.msra.mxu0 %v4274_v51  ;;  %1563 = vmatprep.subr.bf16.mxu1 %v4291_v54  ;;  %v4364_v51 = vld [vmem:[#allocation5 + $0x520] ss:$16 sps:$4 sm:$0xff]   ;;  %v4375_v54 = vld [vmem:[#allocation5 + $0x4ec] ss:$16 sps:$4 sm:$0xff]  }
  0xe8   :  { %1403 = vmatprep.subr.bf16.mxu0 %v4282_v52  ;;  %v4367_v52 = vld [vmem:[#allocation5 + $0x4c8] ss:$16 sps:$4 sm:$0xff]  }
  0xea   :  { %1564 = vmatpush1.bf16.msra.mxu1 %v4289_v57  ;;  %v4370_v57 = vld [vmem:[#allocation5 + $0x540] ss:$16 sps:$4 sm:$0xff]  }
  0xeb   :  { %1404 = vmatpush1.bf16.msra.mxu0 %v4280_v55  ;;  %1565 = vmatprep.subr.bf16.mxu1 %v4297_v58  ;;  %v4373_v55 = vld [vmem:[#allocation5 + $0x4e8] ss:$16 sps:$4 sm:$0xff]   ;;  %v4378_v58 = vld [vmem:[#allocation5 + $0x564] ss:$16 sps:$4 sm:$0xff]  }
  0xec   :  { %1405 = vmatprep.subr.bf16.mxu0 %v4288_v56  ;;  %v4381_v56 = vld [vmem:[#allocation5 + $0x50c] ss:$16 sps:$4 sm:$0xff]  }
  0xee   :  { %1566 = vmatpush1.bf16.msra.mxu1 %v4295_v61  ;;  %v4376_v61 = vld [vmem:[#allocation5 + $0x560] ss:$16 sps:$4 sm:$0xff]  }
  0xef   :  { %1406 = vmatpush1.bf16.msra.mxu0 %v4286_v59  ;;  %1567 = vmatprep.subr.bf16.mxu1 %v4303_v62  ;;  %v4379_v59 = vld [vmem:[#allocation5 + $0x508] ss:$16 sps:$4 sm:$0xff]   ;;  %v4384_v62 = vld [vmem:[#allocation5 + $0x584] ss:$16 sps:$4 sm:$0xff]  }
  0xf0   :  { %1407 = vmatprep.subr.bf16.mxu0 %v4294_v60  ;;  %v4387_v60 = vld [vmem:[#allocation5 + $0x52c] ss:$16 sps:$4 sm:$0xff]  }
  0xf2   :  { %1568 = vmatpush1.bf16.msra.mxu1 %v4301_v2  ;;  %v4382_v2 = vld [vmem:[#allocation5 + $0x580] ss:$16 sps:$4 sm:$0xff]  }
  0xf3   :  { %1408 = vmatpush1.bf16.msra.mxu0 %v4292_v63  ;;  %1569 = vmatprep.subr.bf16.mxu1 %v4309_v3  ;;  %v4385_v63 = vld [vmem:[#allocation5 + $0x528] ss:$16 sps:$4 sm:$0xff]   ;;  %v4390_v3 = vld [vmem:[#allocation5 + $0x5a4] ss:$16 sps:$4 sm:$0xff]  }
  0xf4   :  { %1409 = vmatprep.subr.bf16.mxu0 %v4300_v1  ;;  %v4393_v1 = vld [vmem:[#allocation5 + $0x54c] ss:$16 sps:$4 sm:$0xff]  }
  0xf6   :  { %1570 = vmatpush1.bf16.msra.mxu1 %v4307_v6  ;;  %v4388_v6 = vld [vmem:[#allocation5 + $0x5a0] ss:$16 sps:$4 sm:$0xff]  }
  0xf7   :  { %1410 = vmatpush1.bf16.msra.mxu0 %v4298_v4  ;;  %1571 = vmatprep.subr.bf16.mxu1 %v4315_v8  ;;  %v4391_v4 = vld [vmem:[#allocation5 + $0x548] ss:$16 sps:$4 sm:$0xff]  }
  0xf8   :  { %1411 = vmatprep.subr.bf16.mxu0 %v4306_v5  ;;  %v4399_v5 = vld [vmem:[#allocation5 + $0x56c] ss:$16 sps:$4 sm:$0xff]   ;;  %v4397_v8 = vld [vmem:[#allocation5 + $0x568] ss:$16 sps:$4 sm:$0xff]  }
  0xfa   :  { %1572 = vmatpush1.bf16.msra.mxu1 %v4313_v11  ;;  %v4402_v11 = vld [vmem:[#allocation5 + $0x5e4] ss:$16 sps:$4 sm:$0xff]  }
  0xfb   :  { %1412 = vmatpush1.bf16.msra.mxu0 %v4304_v7  ;;  %1573 = vmatprep.subr.bf16.mxu1 %v4321_v15  ;;  %v4396_v7 = vld [vmem:[#allocation5 + $0x5c4] ss:$16 sps:$4 sm:$0xff]   ;;  %v4400_v15 = vld [vmem:[#allocation5 + $0x5e0] ss:$16 sps:$4 sm:$0xff]  }
  0xfc   :  { %1422 = vmatprep.subr.bf16.mxu0 %v4312_v10  ;;  %v4394_v10 = vld [vmem:[#allocation5 + $0x5c0] ss:$16 sps:$4 sm:$0xff]  }
  0xfe   :  { %1414 = vmatmul.mubr.bf16.vlgmr.msra.gmra.mrb[0].mxu0 %v133_v14  ;;  %1574 = vmatpush1.bf16.msra.mxu1 %v4319_v19  ;;  %v4411_v19 = vld [vmem:[#allocation5 + $0x5cc] ss:$16 sps:$4 sm:$0xff]  }
  0xff   :  { %1423 = vmatpush1.bf16.msra.mxu0 %v4310_v16  ;;  %1454 = vmatprep.mubr.bf16.mxu0 %v136_v17  ;;  %v128_v16 = vld [vmem:[#allocation2 + $0x20] sm:$0xff] }
 0x100   :  { %1424 = vmatprep.subr.bf16.mxu0 %v4318_v18  ;;  %1575 = vmatprep.subr.bf16.mxu1 %v4327_v20  ;;  %v4406_v18 = vld [vmem:[#allocation5 + $0x5a8] ss:$16 sps:$4 sm:$0xff]   ;;  %v4418_v20 = vld [vmem:[#allocation7] ss:$16 sps:$4 sm:$0xff]  }
 0x102   :  { %1576 = vmatpush1.bf16.msra.mxu1 %v4325_v23  ;;  %v4409_v23 = vld [vmem:[#allocation5 + $0x5c8] ss:$16 sps:$4 sm:$0xff]  }
 0x103   :  { %1425 = vmatpush1.bf16.msra.mxu0 %v4316_v21  ;;  %1586 = vmatprep.subr.bf16.mxu1 %v4333_v24  ;;  %v135_v21 = vpack.c.bf16 %v128_v16, %v128_v16  ;;  %v4414_v24 = vld [vmem:[#allocation5 + $0x5ec] ss:$16 sps:$4 sm:$0xff]   ;;  %v4493_v16 = vld [vmem:[#allocation7 + $0x188] ss:$16 sps:$4 sm:$0xff]  }
 0x104   :  { %1426 = vmatprep.subr.bf16.mxu0 %v4324_v22  ;;  %v4426_v22 = vld [vmem:[#allocation7 + $0x24] ss:$16 sps:$4 sm:$0xff]  }
 0x105   :  { %1578 = vmatmul.mubr.bf16.vlgmr.msra.gmra.mrb[4].mxu1 %v133_v14  ;;  %v4408_v14 = vld [vmem:[#allocation5 + $0x5ac] ss:$16 sps:$4 sm:$0xff]  }
 0x106   :  { %1587 = vmatpush1.bf16.msra.mxu1 %v4331_v27  ;;  %1618 = vmatprep.mubr.bf16.mxu1 %v136_v17  ;;  %v4420_v17 = vld [vmem:[#allocation7 + $0x4] ss:$16 sps:$4 sm:$0xff]   ;;  %v4412_v27 = vld [vmem:[#allocation5 + $0x5e8] ss:$16 sps:$4 sm:$0xff]  }
 0x107   :  { %1427 = vmatpush1.bf16.msra.mxu0 %v4322_v25  ;;  %1588 = vmatprep.subr.bf16.mxu1 %v4339_v28  ;;  %v4424_v25 = vld [vmem:[#allocation7 + $0x20] ss:$16 sps:$4 sm:$0xff]   ;;  %v4417_v28 = vld [vmem:[#allocation5 + $0x60c] ss:$16 sps:$4 sm:$0xff]  }
 0x108   :  { %1428 = vmatprep.subr.bf16.mxu0 %v4330_v26  ;;  %v4432_v26 = vld [vmem:[#allocation7 + $0x44] ss:$16 sps:$4 sm:$0xff]  }
 0x10a   :  { %1589 = vmatpush1.bf16.msra.mxu1 %v4337_v31  ;;  %v4415_v31 = vld [vmem:[#allocation5 + $0x608] ss:$16 sps:$4 sm:$0xff]  }
 0x10b   :  { %1429 = vmatpush1.bf16.msra.mxu0 %v4328_v29  ;;  %1590 = vmatprep.subr.bf16.mxu1 %v4345_v32  ;;  %v4430_v29 = vld [vmem:[#allocation7 + $0x40] ss:$16 sps:$4 sm:$0xff]   ;;  %v4423_v32 = vld [vmem:[#allocation7 + $0xc] ss:$16 sps:$4 sm:$0xff]  }
 0x10c   :  { %1430 = vmatprep.subr.bf16.mxu0 %v4336_v30  ;;  %v4438_v30 = vld [vmem:[#allocation7 + $0x64] ss:$16 sps:$4 sm:$0xff]  }
 0x10e   :  { %1591 = vmatpush1.bf16.msra.mxu1 %v4343_v35  ;;  %v4442_v35 = vld [vmem:[#allocation7 + $0x80] ss:$16 sps:$4 sm:$0xff]  }
 0x10f   :  { %1431 = vmatpush1.bf16.msra.mxu0 %v4334_v33  ;;  %1592 = vmatprep.subr.bf16.mxu1 %v4351_v36  ;;  %v4436_v33 = vld [vmem:[#allocation7 + $0x60] ss:$16 sps:$4 sm:$0xff]   ;;  %v4450_v36 = vld [vmem:[#allocation7 + $0xa4] ss:$16 sps:$4 sm:$0xff]  }
 0x110   :  { %1432 = vmatprep.subr.bf16.mxu0 %v4342_v34  ;;  %v4444_v34 = vld [vmem:[#allocation7 + $0x84] ss:$16 sps:$4 sm:$0xff]  }
 0x112   :  { %1593 = vmatpush1.bf16.msra.mxu1 %v4349_v39  ;;  %v4421_v39 = vld [vmem:[#allocation7 + $0x8] ss:$16 sps:$4 sm:$0xff]  }
 0x113   :  { %1433 = vmatpush1.bf16.msra.mxu0 %v4340_v37  ;;  %1594 = vmatprep.subr.bf16.mxu1 %v4357_v40  ;;  %v4448_v37 = vld [vmem:[#allocation7 + $0xa0] ss:$16 sps:$4 sm:$0xff]   ;;  %v4429_v40 = vld [vmem:[#allocation7 + $0x2c] ss:$16 sps:$4 sm:$0xff]  }
 0x114   :  { %1434 = vmatprep.subr.bf16.mxu0 %v4348_v38  ;;  %v4456_v38 = vld [vmem:[#allocation7 + $0xc4] ss:$16 sps:$4 sm:$0xff]  }
 0x116   :  { %1595 = vmatpush1.bf16.msra.mxu1 %v4355_v43  ;;  %v4427_v43 = vld [vmem:[#allocation7 + $0x28] ss:$16 sps:$4 sm:$0xff]  }
 0x117   :  { %1435 = vmatpush1.bf16.msra.mxu0 %v4346_v41  ;;  %1596 = vmatprep.subr.bf16.mxu1 %v4363_v44  ;;  %v4454_v41 = vld [vmem:[#allocation7 + $0xc0] ss:$16 sps:$4 sm:$0xff]   ;;  %v4435_v44 = vld [vmem:[#allocation7 + $0x4c] ss:$16 sps:$4 sm:$0xff]  }
 0x118   :  { %1436 = vmatprep.subr.bf16.mxu0 %v4354_v42  ;;  %v4462_v42 = vld [vmem:[#allocation7 + $0xe4] ss:$16 sps:$4 sm:$0xff]  }
 0x11a   :  { %1597 = vmatpush1.bf16.msra.mxu1 %v4361_v47  ;;  %v4441_v47 = vld [vmem:[#allocation7 + $0x6c] ss:$16 sps:$4 sm:$0xff]  }
 0x11b   :  { %1437 = vmatpush1.bf16.msra.mxu0 %v4352_v45  ;;  %1598 = vmatprep.subr.bf16.mxu1 %v4369_v48  ;;  %v4468_v45 = vld [vmem:[#allocation7 + $0x104] ss:$16 sps:$4 sm:$0xff]   ;;  %v4466_v48 = vld [vmem:[#allocation7 + $0x100] ss:$16 sps:$4 sm:$0xff]  }
 0x11c   :  { %1438 = vmatprep.subr.bf16.mxu0 %v4360_v46  ;;  %v4433_v46 = vld [vmem:[#allocation7 + $0x48] ss:$16 sps:$4 sm:$0xff]  }
 0x11e   :  { %1599 = vmatpush1.bf16.msra.mxu1 %v4367_v52 }
 0x11f   :  { %1439 = vmatpush1.bf16.msra.mxu0 %v4358_v49  ;;  %1600 = vmatprep.subr.bf16.mxu1 %v4375_v54  ;;  %v4474_v49 = vld [vmem:[#allocation7 + $0x124] ss:$16 sps:$4 sm:$0xff]   ;;  %v4472_v54 = vld [vmem:[#allocation7 + $0x120] ss:$16 sps:$4 sm:$0xff]  }
 0x120   :  { %1440 = vmatprep.subr.bf16.mxu0 %v4366_v50 }
 0x122   :  { %1601 = vmatpush1.bf16.msra.mxu1 %v4373_v55 }
 0x123   :  { %1441 = vmatpush1.bf16.msra.mxu0 %v4364_v51  ;;  %1602 = vmatprep.subr.bf16.mxu1 %v4381_v56  ;;  %v4439_v51 = vld [vmem:[#allocation7 + $0x68] ss:$16 sps:$4 sm:$0xff]   ;;  %v4480_v56 = vld [vmem:[#allocation7 + $0x144] ss:$16 sps:$4 sm:$0xff]  }
 0x124   :  { %1442 = vmatprep.subr.bf16.mxu0 %v4372_v53 }
 0x126   :  { %1603 = vmatpush1.bf16.msra.mxu1 %v4379_v59  ;;  %v4478_v59 = vld [vmem:[#allocation7 + $0x140] ss:$16 sps:$4 sm:$0xff]  }
 0x127   :  { %1443 = vmatpush1.bf16.msra.mxu0 %v4370_v57  ;;  %1604 = vmatprep.subr.bf16.mxu1 %v4387_v60  ;;  %v4445_v57 = vld [vmem:[#allocation7 + $0x88] ss:$16 sps:$4 sm:$0xff]  }
 0x128   :  { %1444 = vmatprep.subr.bf16.mxu0 %v4378_v58  ;;  %v4453_v58 = vld [vmem:[#allocation7 + $0xac] ss:$16 sps:$4 sm:$0xff]   ;;  %v4451_v60 = vld [vmem:[#allocation7 + $0xa8] ss:$16 sps:$4 sm:$0xff]  }
 0x12a   :  { %1605 = vmatpush1.bf16.msra.mxu1 %v4385_v63  ;;  %v4465_v63 = vld [vmem:[#allocation7 + $0xec] ss:$16 sps:$4 sm:$0xff]  }
 0x12b   :  { %1445 = vmatpush1.bf16.msra.mxu0 %v4376_v61  ;;  %1606 = vmatprep.subr.bf16.mxu1 %v4393_v1  ;;  %v4459_v61 = vld [vmem:[#allocation7 + $0xcc] ss:$16 sps:$4 sm:$0xff]   ;;  %v4463_v1 = vld [vmem:[#allocation7 + $0xe8] ss:$16 sps:$4 sm:$0xff]  }
 0x12c   :  { %1446 = vmatprep.subr.bf16.mxu0 %v4384_v62  ;;  %v4457_v62 = vld [vmem:[#allocation7 + $0xc8] ss:$16 sps:$4 sm:$0xff]  }
 0x12e   :  { %1607 = vmatpush1.bf16.msra.mxu1 %v4391_v4  ;;  %v4477_v4 = vld [vmem:[#allocation7 + $0x12c] ss:$16 sps:$4 sm:$0xff]  }
 0x12f   :  { %1447 = vmatpush1.bf16.msra.mxu0 %v4382_v2  ;;  %1608 = vmatprep.subr.bf16.mxu1 %v4399_v5  ;;  %v4471_v2 = vld [vmem:[#allocation7 + $0x10c] ss:$16 sps:$4 sm:$0xff]   ;;  %v4475_v5 = vld [vmem:[#allocation7 + $0x128] ss:$16 sps:$4 sm:$0xff]  }
 0x130   :  { %1448 = vmatprep.subr.bf16.mxu0 %v4390_v3  ;;  %v4469_v3 = vld [vmem:[#allocation7 + $0x108] ss:$16 sps:$4 sm:$0xff]  }
 0x132   :  { %1609 = vmatpush1.bf16.msra.mxu1 %v4397_v8  ;;  %v4486_v8 = vld [vmem:[#allocation7 + $0x164] ss:$16 sps:$4 sm:$0xff]  }
 0x133   :  { %1449 = vmatpush1.bf16.msra.mxu0 %v4388_v6  ;;  %1610 = vmatprep.subr.bf16.mxu1 %v4405_v9  ;;  %v4483_v6 = vld [vmem:[#allocation7 + $0x14c] ss:$16 sps:$4 sm:$0xff]  }
 0x134   :  { %1450 = vmatprep.subr.bf16.mxu0 %v4396_v7  ;;  %v4481_v7 = vld [vmem:[#allocation7 + $0x148] ss:$16 sps:$4 sm:$0xff]   ;;  %v4489_v9 = vld [vmem:[#allocation7 + $0x16c] ss:$16 sps:$4 sm:$0xff]  }
 0x136   :  { %1611 = vmatpush1.bf16.msra.mxu1 %v4403_v12  ;;  %v4492_v12 = vld [vmem:[#allocation7 + $0x184] ss:$16 sps:$4 sm:$0xff]  }
 0x137   :  { %1451 = vmatpush1.bf16.msra.mxu0 %v4394_v10  ;;  %1612 = vmatprep.subr.bf16.mxu1 %v4408_v14  ;;  %v4484_v10 = vld [vmem:[#allocation7 + $0x160] ss:$16 sps:$4 sm:$0xff]   ;;  %v4495_v14 = vld [vmem:[#allocation7 + $0x18c] ss:$16 sps:$4 sm:$0xff]  }
 0x138   :  { %1452 = vmatprep.subr.bf16.mxu0 %v4402_v11  ;;  %v4487_v11 = vld [vmem:[#allocation7 + $0x168] ss:$16 sps:$4 sm:$0xff]  }
 0x13a   :  { %1613 = vmatpush1.bf16.msra.mxu1 %v4406_v18  ;;  %v4501_v18 = vld [vmem:[#allocation7 + $0x1ac] ss:$16 sps:$4 sm:$0xff]  }
 0x13b   :  { %1453 = vmatpush1.bf16.msra.mxu0 %v4400_v15  ;;  %1614 = vmatprep.subr.bf16.mxu1 %v4411_v19  ;;  %v4490_v15 = vld [vmem:[#allocation7 + $0x180] ss:$16 sps:$4 sm:$0xff]  }
 0x13c   :  { %2082 = vmatprep.subr.bf16.mxu0 %v4420_v17  ;;  %v4498_v17 = vld [vmem:[#allocation7 + $0x1a4] ss:$16 sps:$4 sm:$0xff]   ;;  %v4496_v19 = vld [vmem:[#allocation7 + $0x1a0] ss:$16 sps:$4 sm:$0xff]  }
 0x13e   :  { %1455 = vmatmul.mubr.bf16.vlgmr.msra.gmra.mrb[0].mxu0 %v135_v21  ;;  %1615 = vmatpush1.bf16.msra.mxu1 %v4409_v23  ;;  %v4502_v23 = vld [vmem:[#allocation7 + $0x1c0] ss:$16 sps:$4 sm:$0xff]  }
 0x13f   :  { %2083 = vmatpush1.bf16.msra.mxu0 %v4418_v20  ;;  %1616 = vmatprep.subr.bf16.mxu1 %v4414_v24  ;;  %v4499_v20 = vld [vmem:[#allocation7 + $0x1a8] ss:$16 sps:$4 sm:$0xff]  }
 0x140   :  { %2084 = vmatprep.subr.bf16.mxu0 %v4426_v22  ;;  %v4507_v22 = vld [vmem:[#allocation7 + $0x1cc] ss:$16 sps:$4 sm:$0xff]   ;;  %v4505_v24 = vld [vmem:[#allocation7 + $0x1c8] ss:$16 sps:$4 sm:$0xff]  }
 0x142   :  { %1617 = vmatpush1.bf16.msra.mxu1 %v4412_v27  ;;  %v4508_v27 = vld [vmem:[#allocation7 + $0x1e0] ss:$16 sps:$4 sm:$0xff]  }
 0x143   :  { %2085 = vmatpush1.bf16.msra.mxu0 %v4424_v25  ;;  %1627 = vmatprep.subr.bf16.mxu1 %v4417_v28  ;;  %v4510_v25 = vld [vmem:[#allocation7 + $0x1e4] ss:$16 sps:$4 sm:$0xff]   ;;  %v4511_v28 = vld [vmem:[#allocation7 + $0x1e8] ss:$16 sps:$4 sm:$0xff]  }
 0x144   :  { %2086 = vmatprep.subr.bf16.mxu0 %v4432_v26  ;;  %v4513_v26 = vld [vmem:[#allocation7 + $0x1ec] ss:$16 sps:$4 sm:$0xff]  }
 0x145   :  { %1619 = vmatmul.mubr.bf16.vlgmr.msra.gmra.mrb[4].mxu1 %v135_v21  ;;  %v4504_v21 = vld [vmem:[#allocation7 + $0x1c4] ss:$16 sps:$4 sm:$0xff]  }
 0x146   :  { %1628 = vmatpush1.bf16.msra.mxu1 %v4415_v31  ;;  %1659 = vmatprep.mubr.bf16.mxu1 %v4919_v0  ;;  %v4460_v0 = vld [vmem:[#allocation7 + $0xe0] ss:$16 sps:$4 sm:$0xff]   ;;  %v336_v31 = vlaneseq }
 0x147   :  { %2087 = vmatpush1.bf16.msra.mxu0 %v4430_v29  ;;  %2123 = vmatprep.subr.bf16.mxu1 %v4423_v32  ;;  %v4514_v29 = vld [vmem:[#allocation8 + $0x40] sm:$0xff]  }
 0x148   :  { %2088 = vmatprep.subr.bf16.mxu0 %v4438_v30  ;;  %v4515_v30 = vld [vmem:[#allocation8 + $0xc0] sm:$0xff]   ;;  %v5088_v32 = vshrl.u32 %v336_v31, 7 }
 0x14b   :  { %2089 = vmatpush1.bf16.msra.mxu0 %v4436_v33  ;;  %v5091_v33 = vsub.s32 0, %v5088_v32 }
 0x14c   :  { %2090 = vmatprep.subr.bf16.mxu0 %v4444_v34  ;;  %v5096_v34 = vld [vmem:[%s5168_s7] sm:$0xf] }
 0x14f   :  { %2091 = vmatpush1.bf16.msra.mxu0 %v4442_v35  ;;  %v5099_v35 = vsub.s32 1, %v5088_v32 }
 0x150   :  { %2092 = vmatprep.subr.bf16.mxu0 %v4450_v36  ;;  %v339_v36 = vrot.slane %v5096_v34, %v5091_v33 }
 0x151   :  { %3763 = vmatmul.mubr.msk.bf16.vlgmr.msra.gmra.mrb[4].mxu1 %vm1336_vm0, %v5076_v13  ;;  %v4447_v13 = vld [vmem:[#allocation7 + $0x8c] ss:$16 sps:$4 sm:$0xff]  }
 0x152   :  { %2124 = vmatpush1.bf16.msra.mxu1 %v4421_v39 }
 0x153   :  { %2093 = vmatpush1.bf16.msra.mxu0 %v4448_v37  ;;  %2125 = vmatprep.subr.bf16.mxu1 %v4429_v40  ;;  %v343_v37 = vrot.slane %v5096_v34, %v5099_v35 }
 0x154   :  { %2094 = vmatprep.subr.bf16.mxu0 %v4456_v38 }
 0x156   :  { %2126 = vmatpush1.bf16.msra.mxu1 %v4427_v43 }
 0x157   :  { %2095 = vmatpush1.bf16.msra.mxu0 %v4454_v41  ;;  %2127 = vmatprep.subr.bf16.mxu1 %v4435_v44 }
 0x158   :  { %2096 = vmatprep.subr.bf16.mxu0 %v4462_v42  ;;  %v5083_v50 = vpop.f32.mrb[0].mxu1 }
 0x159   :  { %v5085_v52 = vpop.f32.mrb[1].mxu1 }
 0x15a   :  { %v1501_v53 = vpop.f32.mrb[2].mxu1  ;;  %2128 = vmatpush1.bf16.msra.mxu1 %v4433_v46 }
 0x15b   :  { %2097 = vmatpush1.bf16.msra.mxu0 %v4460_v0  ;;  %v1502_v55 = vpop.f32.mrb[3].mxu1  ;;  %2129 = vmatprep.subr.bf16.mxu1 %v4441_v47  ;;  %v4519_v53 = vld [vmem:[#allocation8 + $0xc8] sm:$0xff]  }
 0x15c   :  { %2098 = vmatprep.subr.bf16.mxu0 %v4468_v45 }
 0x15e   :  { %2130 = vmatpush1.bf16.msra.mxu1 %v4439_v51 }
 0x15f   :  { %2099 = vmatpush1.bf16.msra.mxu0 %v4466_v48  ;;  %2131 = vmatprep.subr.bf16.mxu1 %v4447_v13  ;;  %v4516_v48 = vld [vmem:[#allocation8] sm:$0xff]   ;;  %v4518_v13 = vld [vmem:[#allocation8 + $0x48] sm:$0xff]  }
 0x160   :  { %2100 = vmatprep.subr.bf16.mxu0 %v4474_v49  ;;  %v4517_v49 = vld [vmem:[#allocation8 + $0x80] sm:$0xff]  }
 0x162   :  { %2132 = vmatpush1.bf16.msra.mxu1 %v4445_v57 }
 0x163   :  { %2101 = vmatpush1.bf16.msra.mxu0 %v4472_v54  ;;  %2133 = vmatprep.subr.bf16.mxu1 %v4453_v58  ;;  %v4521_v54 = vld [vmem:[#allocation8 + $0x88] sm:$0xff]  }
 0x164   :  { %2102 = vmatprep.subr.bf16.mxu0 %v4480_v56  ;;  %v4523_v56 = vld [vmem:[#allocation8 + $0xd0] sm:$0xff]  }
 0x166   :  { %2134 = vmatpush1.bf16.msra.mxu1 %v4451_v60  ;;  %v4524_v60 = vld [vmem:[#allocation8 + $0x10] sm:$0xff]  }
 0x167   :  { %2103 = vmatpush1.bf16.msra.mxu0 %v4478_v59  ;;  %2135 = vmatprep.subr.bf16.mxu1 %v4459_v61  ;;  %v4525_v61 = vld [vmem:[#allocation8 + $0x90] sm:$0xff]  }
 0x168   :  { %2104 = vmatprep.subr.bf16.mxu0 %v4486_v8  ;;  %v4535_v8 = vld [vmem:[#allocation8 + $0xe8] sm:$0xff]  }
 0x16a   :  { %2136 = vmatpush1.bf16.msra.mxu1 %v4457_v62  ;;  %v4526_v62 = vld [vmem:[#allocation8 + $0x58] sm:$0xff]  }
 0x16b   :  { %2137 = vmatprep.subr.bf16.mxu1 %v4465_v63  ;;  %2105 = vmatpush1.bf16.msra.mxu0 %v4484_v10  ;;  %v4527_v63 = vld [vmem:[#allocation8 + $0xd8] sm:$0xff]   ;;  %v4537_v10 = vld [vmem:[#allocation8 + $0xa8] sm:$0xff]  }
 0x16c   :  { %2106 = vmatprep.subr.bf16.mxu0 %v4492_v12  ;;  %v4539_v12 = vld [vmem:[#allocation8 + $0xf0] sm:$0xff]  }
 0x16e   :  { %2138 = vmatpush1.bf16.msra.mxu1 %v4463_v1  ;;  %v4528_v1 = vld [vmem:[#allocation8 + $0x18] sm:$0xff]  }
 0x16f   :  { %2139 = vmatprep.subr.bf16.mxu1 %v4471_v2  ;;  %2107 = vmatpush1.bf16.msra.mxu0 %v4490_v15  ;;  %v4529_v2 = vld [vmem:[#allocation8 + $0x98] sm:$0xff]   ;;  %v4541_v15 = vld [vmem:[#allocation8 + $0xb0] sm:$0xff]  }
 0x170   :  { %2108 = vmatprep.subr.bf16.mxu0 %v4498_v17  ;;  %v4543_v17 = vld [vmem:[#allocation8 + $0xf8] sm:$0xff]  }
 0x172   :  { %2140 = vmatpush1.bf16.msra.mxu1 %v4469_v3  ;;  %v4530_v3 = vld [vmem:[#allocation8 + $0x60] sm:$0xff]  }
 0x173   :  { %2141 = vmatprep.subr.bf16.mxu1 %v4477_v4  ;;  %2109 = vmatpush1.bf16.msra.mxu0 %v4496_v19  ;;  %v4531_v4 = vld [vmem:[#allocation8 + $0xe0] sm:$0xff]   ;;  %v4545_v19 = vld [vmem:[#allocation8 + $0xb8] sm:$0xff]  }
 0x174   :  { %2110 = vmatprep.subr.bf16.mxu0 %v4504_v21  ;;  %v4551_v21 = vld [vmem:[#allocation10 + $0xc] ss:$16 sps:$4 sm:$0xff]  }
 0x176   :  { %2142 = vmatpush1.bf16.msra.mxu1 %v4475_v5  ;;  %v4532_v5 = vld [vmem:[#allocation8 + $0x20] sm:$0xff]  }
 0x177   :  { %2143 = vmatprep.subr.bf16.mxu1 %v4483_v6  ;;  %2111 = vmatpush1.bf16.msra.mxu0 %v4502_v23  ;;  %v4533_v6 = vld [vmem:[#allocation8 + $0xa0] sm:$0xff]  }
 0x178   :  { %2112 = vmatprep.subr.bf16.mxu0 %v4510_v25  ;;  %v5118_v25 = vsub.s32 2, %v5088_v32 }
 0x17a   :  { %2144 = vmatpush1.bf16.msra.mxu1 %v4481_v7  ;;  %v4534_v7 = vld [vmem:[#allocation8 + $0x68] sm:$0xff]  }
 0x17b   :  { %2145 = vmatprep.subr.bf16.mxu1 %v4489_v9  ;;  %2113 = vmatpush1.bf16.msra.mxu0 %v4508_v27  ;;  %v4536_v9 = vld [vmem:[#allocation8 + $0x28] sm:$0xff]  }
 0x17c   :  { %3975 = vmatprep.subr.bf16.mxu0 %v4514_v29 }
 0x17e   :  { %2146 = vmatpush1.bf16.msra.mxu1 %v4487_v11  ;;  %v4538_v11 = vld [vmem:[#allocation8 + $0x70] sm:$0xff]  }
 0x17f   :  { %2147 = vmatprep.subr.bf16.mxu1 %v4495_v14  ;;  %v4540_v14 = vld [vmem:[#allocation8 + $0x30] sm:$0xff]  }
 0x182   :  { %2148 = vmatpush1.bf16.msra.mxu1 %v4493_v16  ;;  %v4542_v16 = vld [vmem:[#allocation8 + $0x78] sm:$0xff]  }
 0x183   :  { %2149 = vmatprep.subr.bf16.mxu1 %v4501_v18  ;;  %v4544_v18 = vld [vmem:[#allocation8 + $0x38] sm:$0xff]  }
 0x186   :  { %2150 = vmatpush1.bf16.msra.mxu1 %v4499_v20  ;;  %v4548_v20 = vld [vmem:[#allocation10 + $0x4] ss:$16 sps:$4 sm:$0xff]  }
 0x187   :  { %2151 = vmatprep.subr.bf16.mxu1 %v4507_v22  ;;  %v5110_v22 = vsub.s32 3, %v5088_v32 }
 0x189   :  { %v351_v23 = vrot.slane %v5096_v34, %v5110_v22 }
 0x18a   :  { %2152 = vmatpush1.bf16.msra.mxu1 %v4505_v24  ;;  %v1740_v24 = vld [vmem:[%s5168_s7 + $0x4] sm:$0xf] }
 0x18b   :  { %2153 = vmatprep.subr.bf16.mxu1 %v4513_v26  ;;  %v1745_v26 = vrot.slane %v1740_v24, %v5091_v33  ;;  %v1753_v27 = vrot.slane %v1740_v24, %v5118_v25  ;;  %v1749_v29 = vrot.slane %v1740_v24, %v5099_v35 }
 0x18e   :  { %2154 = vmatpush1.bf16.msra.mxu1 %v4511_v28 }
 0x18f   :  { %3997 = vmatprep.subr.bf16.mxu1 %v4515_v30  ;;  %v1757_v30 = vrot.slane %v1740_v24, %v5110_v22  ;;  %v4591_v24 = vld [vmem:[#allocation10 + $0xe8] ss:$16 sps:$4 sm:$0xff]  }
 0x211   :  { %v1456_v38 = vpop.f32.mrb[0].mxu0 }
 0x212   :  { %v4085_v39 = vadd.f32 %v1456_v38, %v339_v36  ;;  %v1458_v40 = vpop.f32.mrb[1].mxu0 }
 0x213   :  { %v4087_v41 = vadd.f32 %v1458_v40, %v343_v37  ;;  %v1460_v42 = vpop.f32.mrb[2].mxu0 }
 0x214   :  { %v4086_v43 = vadd.f32 %v4085_v39, %v5083_v50  ;;  %v1461_v44 = vpop.f32.mrb[3].mxu0  ;;  %v4520_v50 = vld [vmem:[#allocation8 + $0x8] sm:$0xff]  }
 0x215   :  { %v4088_v0 = vadd.f32 %v4087_v41, %v5085_v52  ;;  %v4522_v52 = vld [vmem:[#allocation8 + $0x50] sm:$0xff]  }
 0x216   :  { %4690 = vtanh.f32 %v4086_v43 }
 0x217   :  { %4692 = vtanh.f32 %v4088_v0 }
 0x220   :  { %v4691_v45 = vpop.eup %4690 }
 0x221   :  { %v4693_v46 = vpop.eup %4692  ;;  %v1672_v51 = vpack.c.bf16 %v4691_v45, %v4691_v45 }
 0x222   :  { %v1673_v47 = vpack.c.bf16 %v4693_v46, %v4693_v46 }
 0x224   :  { %2114 = vmatprep.mubr.bf16.mxu0 %v1673_v47  ;;  %2155 = vmatprep.mubr.bf16.mxu1 %v1673_v47  ;;  %v5107_v55 = vpop.f32.mrb[4].mxu1 }
 0x225   :  { %2115 = vmatmul.mubr.bf16.vlgmr.msra.gmra.mrb[4].mxu0 %v1672_v51  ;;  %2156 = vmatmul.mubr.bf16.vlgmr.msra.gmra.mrb[8].mxu1 %v1672_v51  ;;  %v1663_v57 = vpop.f32.mrb[5].mxu1 }
 0x226   :  { %3976 = vmatpush3.bf16.msra.mxu0 %v4516_v48  ;;  %3998 = vmatpush3.bf16.msra.mxu1 %v4517_v49  ;;  %v1665_v58 = vpop.f32.mrb[6].mxu1  ;;  %v4090_v28 = vadd.f32 %v1663_v57, %v351_v23  ;;  %v4554_v57 = vld [vmem:[#allocation10 + $0x24] ss:$16 sps:$4 sm:$0xff]   ;;  %v4588_v23 = vld [vmem:[#allocation10 + $0xe0] ss:$16 sps:$4 sm:$0xff]  }
 0x227   :  { %3977 = vmatprep.subr.bf16.mxu0 %v4518_v13  ;;  %3999 = vmatprep.subr.bf16.mxu1 %v4519_v53  ;;  %v1666_v59 = vpop.f32.mrb[7].mxu1  ;;  %v4546_v53 = vld [vmem:[#allocation10] ss:$16 sps:$4 sm:$0xff]  }
 0x228   :  { %4694 = vtanh.f32 %v4090_v28  ;;  %v4557_v59 = vld [vmem:[#allocation10 + $0x2c] ss:$16 sps:$4 sm:$0xff]   ;;  %v4594_v28 = vld [vmem:[#allocation10 + $0x100] ss:$16 sps:$4 sm:$0xff]  }
 0x22a   :  { %3978 = vmatpush3.bf16.msra.mxu0 %v4520_v50  ;;  %4000 = vmatpush3.bf16.msra.mxu1 %v4521_v54 }
 0x22b   :  { %3979 = vmatprep.subr.bf16.mxu0 %v4522_v52  ;;  %4001 = vmatprep.subr.bf16.mxu1 %v4523_v56  ;;  %v4549_v52 = vld [vmem:[#allocation10 + $0x8] ss:$16 sps:$4 sm:$0xff]  }
 0x22e   :  { %3980 = vmatpush3.bf16.msra.mxu0 %v4524_v60  ;;  %4002 = vmatpush3.bf16.msra.mxu1 %v4525_v61  ;;  %v4552_v60 = vld [vmem:[#allocation10 + $0x20] ss:$16 sps:$4 sm:$0xff]   ;;  %v4555_v61 = vld [vmem:[#allocation10 + $0x28] ss:$16 sps:$4 sm:$0xff]  }
 0x22f   :  { %3981 = vmatprep.subr.bf16.mxu0 %v4526_v62  ;;  %4003 = vmatprep.subr.bf16.mxu1 %v4527_v63  ;;  %v4560_v62 = vld [vmem:[#allocation10 + $0x44] ss:$16 sps:$4 sm:$0xff]   ;;  %v4563_v63 = vld [vmem:[#allocation10 + $0x4c] ss:$16 sps:$4 sm:$0xff]  }
 0x232   :  { %3982 = vmatpush3.bf16.msra.mxu0 %v4528_v1  ;;  %4004 = vmatpush3.bf16.msra.mxu1 %v4529_v2  ;;  %v4695_v46 = vpop.eup %4694  ;;  %v4558_v1 = vld [vmem:[#allocation10 + $0x40] ss:$16 sps:$4 sm:$0xff]   ;;  %v4561_v2 = vld [vmem:[#allocation10 + $0x48] ss:$16 sps:$4 sm:$0xff]  }
 0x233   :  { %3983 = vmatprep.subr.bf16.mxu0 %v4530_v3  ;;  %4005 = vmatprep.subr.bf16.mxu1 %v4531_v4  ;;  %v1675_v58 = vpack.c.bf16 %v4695_v46, %v4695_v46  ;;  %v4566_v3 = vld [vmem:[#allocation10 + $0x64] ss:$16 sps:$4 sm:$0xff]   ;;  %v4569_v4 = vld [vmem:[#allocation10 + $0x6c] ss:$16 sps:$4 sm:$0xff]  }
 0x234   :  { %v4620_v46 = vld [vmem:[#allocation10 + $0x184] ss:$16 sps:$4 sm:$0xff]  }
 0x236   :  { %3984 = vmatpush3.bf16.msra.mxu0 %v4532_v5  ;;  %4006 = vmatpush3.bf16.msra.mxu1 %v4533_v6  ;;  %v4564_v5 = vld [vmem:[#allocation10 + $0x60] ss:$16 sps:$4 sm:$0xff]   ;;  %v4567_v6 = vld [vmem:[#allocation10 + $0x68] ss:$16 sps:$4 sm:$0xff]  }
 0x237   :  { %3985 = vmatprep.subr.bf16.mxu0 %v4534_v7  ;;  %4007 = vmatprep.subr.bf16.mxu1 %v4535_v8  ;;  %v4572_v7 = vld [vmem:[#allocation10 + $0x84] ss:$16 sps:$4 sm:$0xff]   ;;  %v4575_v8 = vld [vmem:[#allocation10 + $0x8c] ss:$16 sps:$4 sm:$0xff]  }
 0x23a   :  { %3986 = vmatpush3.bf16.msra.mxu0 %v4536_v9  ;;  %4008 = vmatpush3.bf16.msra.mxu1 %v4537_v10  ;;  %v4570_v9 = vld [vmem:[#allocation10 + $0x80] ss:$16 sps:$4 sm:$0xff]   ;;  %v4573_v10 = vld [vmem:[#allocation10 + $0x88] ss:$16 sps:$4 sm:$0xff]  }
 0x23b   :  { %3987 = vmatprep.subr.bf16.mxu0 %v4538_v11  ;;  %4009 = vmatprep.subr.bf16.mxu1 %v4539_v12  ;;  %v4578_v11 = vld [vmem:[#allocation10 + $0xa4] ss:$16 sps:$4 sm:$0xff]   ;;  %v4581_v12 = vld [vmem:[#allocation10 + $0xac] ss:$16 sps:$4 sm:$0xff]  }
 0x23e   :  { %3988 = vmatpush3.bf16.msra.mxu0 %v4540_v14  ;;  %4010 = vmatpush3.bf16.msra.mxu1 %v4541_v15  ;;  %v4576_v14 = vld [vmem:[#allocation10 + $0xa0] ss:$16 sps:$4 sm:$0xff]   ;;  %v4579_v15 = vld [vmem:[#allocation10 + $0xa8] ss:$16 sps:$4 sm:$0xff]  }
 0x23f   :  { %3989 = vmatprep.subr.bf16.mxu0 %v4542_v16  ;;  %4011 = vmatprep.subr.bf16.mxu1 %v4543_v17  ;;  %v4584_v16 = vld [vmem:[#allocation10 + $0xc4] ss:$16 sps:$4 sm:$0xff]   ;;  %v4587_v17 = vld [vmem:[#allocation10 + $0xcc] ss:$16 sps:$4 sm:$0xff]  }
 0x242   :  { %3990 = vmatpush3.bf16.msra.mxu0 %v4544_v18  ;;  %4012 = vmatpush3.bf16.msra.mxu1 %v4545_v19  ;;  %v4582_v18 = vld [vmem:[#allocation10 + $0xc0] ss:$16 sps:$4 sm:$0xff]   ;;  %v4585_v19 = vld [vmem:[#allocation10 + $0xc8] ss:$16 sps:$4 sm:$0xff]  }
 0x243   :  { %2923 = vmatprep.subr.bf16.mxu0 %v4548_v20  ;;  %2964 = vmatprep.subr.bf16.mxu1 %v4551_v21  ;;  %v4590_v20 = vld [vmem:[#allocation10 + $0xe4] ss:$16 sps:$4 sm:$0xff]   ;;  %v4593_v21 = vld [vmem:[#allocation10 + $0xec] ss:$16 sps:$4 sm:$0xff]  }
 0x2f8   :  { %v2116_v36 = vpop.f32.mrb[4].mxu0  ;;  %v2157_v37 = vpop.f32.mrb[8].mxu1 }
 0x2f9   :  { %v2117_v38 = vadd.f32 %v2116_v36, %v1745_v26  ;;  %v2158_v39 = vadd.f32 %v2157_v37, %v1753_v27  ;;  %v2118_v40 = vpop.f32.mrb[5].mxu0  ;;  %v2159_v41 = vpop.f32.mrb[9].mxu1  ;;  %v4596_v26 = vld [vmem:[#allocation10 + $0x104] ss:$16 sps:$4 sm:$0xff]   ;;  %v4599_v27 = vld [vmem:[#allocation10 + $0x10c] ss:$16 sps:$4 sm:$0xff]  }
 0x2fa   :  { %v2119_v42 = vadd.f32 %v2118_v40, %v1749_v29  ;;  %v2160_v43 = vadd.f32 %v2159_v41, %v1757_v30  ;;  %v2120_v32 = vpop.f32.mrb[6].mxu0  ;;  %v2161_v44 = vpop.f32.mrb[10].mxu1  ;;  %v4597_v29 = vld [vmem:[#allocation10 + $0x108] ss:$16 sps:$4 sm:$0xff]   ;;  %v4602_v30 = vld [vmem:[#allocation10 + $0x124] ss:$16 sps:$4 sm:$0xff]  }
 0x2fb   :  { %4696 = vtanh.f32 %v2117_v38  ;;  %v2121_v0 = vpop.f32.mrb[7].mxu0  ;;  %v2162_v45 = vpop.f32.mrb[11].mxu1  ;;  %v4605_v36 = vld [vmem:[#allocation10 + $0x12c] ss:$16 sps:$4 sm:$0xff]   ;;  %v4600_v37 = vld [vmem:[#allocation10 + $0x120] ss:$16 sps:$4 sm:$0xff]   ;;  %v347_v44 = vrot.slane %v5096_v34, %v5118_v25 }
 0x2fc   :  { %4698 = vtanh.f32 %v2158_v39  ;;  %v4603_v38 = vld [vmem:[#allocation10 + $0x128] ss:$16 sps:$4 sm:$0xff]   ;;  %v4608_v39 = vld [vmem:[#allocation10 + $0x144] ss:$16 sps:$4 sm:$0xff]   ;;  %v4611_v40 = vld [vmem:[#allocation10 + $0x14c] ss:$16 sps:$4 sm:$0xff]  }
 0x2fd   :  { %4700 = vtanh.f32 %v2119_v42  ;;  %v4606_v41 = vld [vmem:[#allocation10 + $0x140] ss:$16 sps:$4 sm:$0xff]   ;;  %v4609_v42 = vld [vmem:[#allocation10 + $0x148] ss:$16 sps:$4 sm:$0xff]   ;;  %v4617_v32 = vld [vmem:[#allocation10 + $0x16c] ss:$16 sps:$4 sm:$0xff]  }
 0x2fe   :  { %4702 = vtanh.f32 %v2160_v43  ;;  %v4614_v43 = vld [vmem:[#allocation10 + $0x164] ss:$16 sps:$4 sm:$0xff]   ;;  %v4612_v0 = vld [vmem:[#allocation10 + $0x160] ss:$16 sps:$4 sm:$0xff]   ;;  %v4615_v45 = vld [vmem:[#allocation10 + $0x168] ss:$16 sps:$4 sm:$0xff]  }
 0x2ff   :  { %v4624_v34 = vld [vmem:[#allocation10 + $0x1a0] ss:$16 sps:$4 sm:$0xff]  }
 0x305   :  { %v4697_v47 = vpop.eup %4696 }
 0x306   :  { %v4699_v48 = vpop.eup %4698  ;;  %v2168_v50 = vpack.c.bf16 %v4697_v47, %v4697_v47  ;;  %v4623_v47 = vld [vmem:[#allocation10 + $0x18c] ss:$16 sps:$4 sm:$0xff]  }
 0x307   :  { %v4701_v49 = vpop.eup %4700  ;;  %v2170_v56 = vpack.c.bf16 %v4699_v48, %v4699_v48  ;;  %v4089_v48 = vadd.f32 %v5107_v55, %v347_v44  ;;  %v4633_v55 = vld [vmem:[#allocation10 + $0x1c8] ss:$16 sps:$4 sm:$0xff]  }
 0x308   :  { %v4703_v51 = vpop.eup %4702  ;;  %v2169_v13 = vpack.c.bf16 %v4701_v49, %v4701_v49  ;;  %v4618_v49 = vld [vmem:[#allocation10 + $0x180] ss:$16 sps:$4 sm:$0xff]  }
 0x309   :  { %v2171_v54 = vpack.c.bf16 %v4703_v51, %v4703_v51  ;;  %v4621_v51 = vld [vmem:[#allocation10 + $0x188] ss:$16 sps:$4 sm:$0xff]   ;;  %4704 = vtanh.f32 %v4089_v48 }
 0x30a   :  { %2467 = vmatprep.mubr.bf16.mxu0 %v2169_v13  ;;  %v4626_v13 = vld [vmem:[#allocation10 + $0x1a4] ss:$16 sps:$4 sm:$0xff]  }
 0x30b   :  { %2507 = vmatprep.mubr.bf16.mxu1 %v2171_v54  ;;  %2468 = vmatmul.mubr.bf16.vlgmr.msra.gmra.mrb[8].mxu0 %v2168_v50  ;;  %v4627_v50 = vld [vmem:[#allocation10 + $0x1a8] ss:$16 sps:$4 sm:$0xff]   ;;  %v4632_v54 = vld [vmem:[#allocation10 + $0x1c4] ss:$16 sps:$4 sm:$0xff]  }
 0x30c   :  { %2508 = vmatmul.mubr.bf16.vlgmr.msra.gmra.mrb[12].mxu1 %v2170_v56  ;;  %2924 = vmatpush1.bf16.msra.mxu0 %v4546_v53  ;;  %v4629_v53 = vld [vmem:[#allocation10 + $0x1ac] ss:$16 sps:$4 sm:$0xff]   ;;  %v4630_v56 = vld [vmem:[#allocation10 + $0x1c0] ss:$16 sps:$4 sm:$0xff]  }
 0x30d   :  { %2965 = vmatpush1.bf16.msra.mxu1 %v4549_v52  ;;  %2955 = vmatprep.mubr.bf16.mxu0 %v1675_v58  ;;  %v4635_v52 = vld [vmem:[#allocation10 + $0x1cc] ss:$16 sps:$4 sm:$0xff]  }
 0x30e   :  { %2996 = vmatprep.mubr.bf16.mxu1 %v1675_v58  ;;  %2925 = vmatprep.subr.bf16.mxu0 %v4554_v57  ;;  %v4638_v57 = vld [vmem:[#allocation10 + $0x1e4] ss:$16 sps:$4 sm:$0xff]   ;;  %v4641_v58 = vld [vmem:[#allocation10 + $0x1ec] ss:$16 sps:$4 sm:$0xff]  }
 0x30f   :  { %2966 = vmatprep.subr.bf16.mxu1 %v4557_v59  ;;  %v4636_v59 = vld [vmem:[#allocation10 + $0x1e0] ss:$16 sps:$4 sm:$0xff]  }
 0x310   :  { %2926 = vmatpush1.bf16.msra.mxu0 %v4552_v60  ;;  %v4639_v60 = vld [vmem:[#allocation10 + $0x1e8] ss:$16 sps:$4 sm:$0xff]  }
 0x311   :  { %2967 = vmatpush1.bf16.msra.mxu1 %v4555_v61  ;;  %2927 = vmatprep.subr.bf16.mxu0 %v4560_v62 }
 0x312   :  { %2968 = vmatprep.subr.bf16.mxu1 %v4563_v63  ;;  %v4642_v63 = vld [vmem:[#allocation11 + $0x40] sm:$0xff]  }
 0x313   :  { %v4705_v61 = vpop.eup %4704 }
 0x314   :  { %2928 = vmatpush1.bf16.msra.mxu0 %v4558_v1  ;;  %v1674_v62 = vpack.c.bf16 %v4705_v61, %v4705_v61  ;;  %v4643_v1 = vld [vmem:[#allocation11 + $0xc0] sm:$0xff]  }
 0x315   :  { %2969 = vmatpush1.bf16.msra.mxu1 %v4561_v2  ;;  %2929 = vmatprep.subr.bf16.mxu0 %v4566_v3  ;;  %v4644_v2 = vld [vmem:[#allocation11] sm:$0xff]  }
 0x316   :  { %2970 = vmatprep.subr.bf16.mxu1 %v4569_v4  ;;  %v4645_v3 = vld [vmem:[#allocation11 + $0x80] sm:$0xff]   ;;  %v4646_v4 = vld [vmem:[#allocation11 + $0x48] sm:$0xff]  }
 0x318   :  { %2930 = vmatpush1.bf16.msra.mxu0 %v4564_v5  ;;  %v4647_v5 = vld [vmem:[#allocation11 + $0xc8] sm:$0xff]  }
 0x319   :  { %2971 = vmatpush1.bf16.msra.mxu1 %v4567_v6  ;;  %2931 = vmatprep.subr.bf16.mxu0 %v4572_v7  ;;  %v4648_v6 = vld [vmem:[#allocation11 + $0x8] sm:$0xff]  }
 0x31a   :  { %2972 = vmatprep.subr.bf16.mxu1 %v4575_v8  ;;  %v4649_v7 = vld [vmem:[#allocation11 + $0x88] sm:$0xff]   ;;  %v4650_v8 = vld [vmem:[#allocation11 + $0x50] sm:$0xff]  }
 0x31c   :  { %2932 = vmatpush1.bf16.msra.mxu0 %v4570_v9  ;;  %v4651_v9 = vld [vmem:[#allocation11 + $0xd0] sm:$0xff]  }
 0x31d   :  { %2973 = vmatpush1.bf16.msra.mxu1 %v4573_v10  ;;  %2933 = vmatprep.subr.bf16.mxu0 %v4578_v11  ;;  %v4652_v10 = vld [vmem:[#allocation11 + $0x10] sm:$0xff]  }
 0x31e   :  { %2974 = vmatprep.subr.bf16.mxu1 %v4581_v12  ;;  %v4653_v11 = vld [vmem:[#allocation11 + $0x90] sm:$0xff]   ;;  %v4654_v12 = vld [vmem:[#allocation11 + $0x58] sm:$0xff]  }
 0x320   :  { %2934 = vmatpush1.bf16.msra.mxu0 %v4576_v14  ;;  %v4655_v14 = vld [vmem:[#allocation11 + $0xd8] sm:$0xff]  }
 0x321   :  { %2975 = vmatpush1.bf16.msra.mxu1 %v4579_v15  ;;  %2935 = vmatprep.subr.bf16.mxu0 %v4584_v16  ;;  %v4656_v15 = vld [vmem:[#allocation11 + $0x18] sm:$0xff]  }
 0x322   :  { %2976 = vmatprep.subr.bf16.mxu1 %v4587_v17  ;;  %v4657_v16 = vld [vmem:[#allocation11 + $0x98] sm:$0xff]   ;;  %v4658_v17 = vld [vmem:[#allocation11 + $0x60] sm:$0xff]  }
 0x324   :  { %2936 = vmatpush1.bf16.msra.mxu0 %v4582_v18  ;;  %v4659_v18 = vld [vmem:[#allocation11 + $0xe0] sm:$0xff]  }
 0x325   :  { %2977 = vmatpush1.bf16.msra.mxu1 %v4585_v19  ;;  %2937 = vmatprep.subr.bf16.mxu0 %v4590_v20  ;;  %v4660_v19 = vld [vmem:[#allocation11 + $0x20] sm:$0xff]  }
 0x326   :  { %2978 = vmatprep.subr.bf16.mxu1 %v4593_v21  ;;  %v4661_v20 = vld [vmem:[#allocation11 + $0xa0] sm:$0xff]   ;;  %v4662_v21 = vld [vmem:[#allocation11 + $0x68] sm:$0xff]  }
 0x328   :  { %2938 = vmatpush1.bf16.msra.mxu0 %v4588_v23  ;;  %v4663_v23 = vld [vmem:[#allocation11 + $0xe8] sm:$0xff]  }
 0x329   :  { %2979 = vmatpush1.bf16.msra.mxu1 %v4591_v24  ;;  %2939 = vmatprep.subr.bf16.mxu0 %v4596_v26  ;;  %v4664_v24 = vld [vmem:[#allocation11 + $0x28] sm:$0xff]  }
 0x32a   :  { %2980 = vmatprep.subr.bf16.mxu1 %v4599_v27  ;;  %v4665_v26 = vld [vmem:[#allocation11 + $0xa8] sm:$0xff]   ;;  %v4666_v27 = vld [vmem:[#allocation11 + $0x70] sm:$0xff]  }
 0x32c   :  { %2940 = vmatpush1.bf16.msra.mxu0 %v4594_v28  ;;  %v4667_v28 = vld [vmem:[#allocation11 + $0xf0] sm:$0xff]  }
 0x32d   :  { %2981 = vmatpush1.bf16.msra.mxu1 %v4597_v29  ;;  %2941 = vmatprep.subr.bf16.mxu0 %v4602_v30  ;;  %v4668_v29 = vld [vmem:[#allocation11 + $0x30] sm:$0xff]  }
 0x32e   :  { %2982 = vmatprep.subr.bf16.mxu1 %v4605_v36  ;;  %v4669_v30 = vld [vmem:[#allocation11 + $0xb0] sm:$0xff]   ;;  %v4670_v36 = vld [vmem:[#allocation11 + $0x78] sm:$0xff]  }
 0x330   :  { %2942 = vmatpush1.bf16.msra.mxu0 %v4600_v37  ;;  %v4671_v37 = vld [vmem:[#allocation11 + $0xf8] sm:$0xff]  }
 0x331   :  { %2983 = vmatpush1.bf16.msra.mxu1 %v4603_v38  ;;  %2943 = vmatprep.subr.bf16.mxu0 %v4608_v39  ;;  %v4672_v38 = vld [vmem:[#allocation11 + $0x38] sm:$0xff]  }
 0x332   :  { %2984 = vmatprep.subr.bf16.mxu1 %v4611_v40  ;;  %v4673_v39 = vld [vmem:[#allocation11 + $0xb8] sm:$0xff]   ;;  %v4674_v40 = vld [vmem:[#allocation13 + $0x40] sm:$0xff]  }
 0x334   :  { %2944 = vmatpush1.bf16.msra.mxu0 %v4606_v41 }
 0x335   :  { %2985 = vmatpush1.bf16.msra.mxu1 %v4609_v42  ;;  %2945 = vmatprep.subr.bf16.mxu0 %v4614_v43  ;;  %v3828_v43 = vld [vmem:[%s5168_s7 + $0x8] ss:$0 sm:$0xff] }
 0x336   :  { %2986 = vmatprep.subr.bf16.mxu1 %v4617_v32 }
 0x338   :  { %2946 = vmatpush1.bf16.msra.mxu0 %v4612_v0 }
 0x339   :  { %2987 = vmatpush1.bf16.msra.mxu1 %v4615_v45  ;;  %2947 = vmatprep.subr.bf16.mxu0 %v4620_v46 }
 0x33a   :  { %2988 = vmatprep.subr.bf16.mxu1 %v4623_v47 }
 0x33c   :  { %2948 = vmatpush1.bf16.msra.mxu0 %v4618_v49 }
 0x33d   :  { %2989 = vmatpush1.bf16.msra.mxu1 %v4621_v51  ;;  %2949 = vmatprep.subr.bf16.mxu0 %v4626_v13 }
 0x33e   :  { %2990 = vmatprep.subr.bf16.mxu1 %v4629_v53  ;;  %v2581_v53 = vld [vmem:[%s5168_s7 + $0x9] sm:$0xf] }
 0x340   :  { %2950 = vmatpush1.bf16.msra.mxu0 %v4624_v34  ;;  %v2586_v34 = vrot.slane %v2581_v53, %v5091_v33 }
 0x341   :  { %2991 = vmatpush1.bf16.msra.mxu1 %v4627_v50  ;;  %2951 = vmatprep.subr.bf16.mxu0 %v4632_v54  ;;  %v2594_v50 = vrot.slane %v2581_v53, %v5118_v25  ;;  %v2590_v54 = vrot.slane %v2581_v53, %v5099_v35 }
 0x342   :  { %2992 = vmatprep.subr.bf16.mxu1 %v4635_v52  ;;  %v2598_v52 = vrot.slane %v2581_v53, %v5110_v22 }
 0x344   :  { %2952 = vmatpush1.bf16.msra.mxu0 %v4630_v56 }
 0x345   :  { %2993 = vmatpush1.bf16.msra.mxu1 %v4633_v55  ;;  %2953 = vmatprep.subr.bf16.mxu0 %v4638_v57 }
 0x346   :  { %2994 = vmatprep.subr.bf16.mxu1 %v4641_v58 }
 0x348   :  { %2954 = vmatpush1.bf16.msra.mxu0 %v4636_v59 }
 0x349   :  { %2995 = vmatpush1.bf16.msra.mxu1 %v4639_v60  ;;  %4019 = vmatprep.subr.bf16.mxu0 %v4642_v63 }
 0x34a   :  { %4041 = vmatprep.subr.bf16.mxu1 %v4643_v1 }
 0x34b   :  { %2956 = vmatmul.mubr.bf16.vlgmr.msra.gmra.mrb[12].mxu0 %v1674_v62 }
 0x34c   :  { %2997 = vmatmul.mubr.bf16.vlgmr.msra.gmra.mrb[16].mxu1 %v1674_v62  ;;  %4020 = vmatpush3.bf16.msra.mxu0 %v4644_v2 }
 0x34d   :  { %4042 = vmatpush3.bf16.msra.mxu1 %v4645_v3  ;;  %4021 = vmatprep.subr.bf16.mxu0 %v4646_v4 }
 0x34e   :  { %4043 = vmatprep.subr.bf16.mxu1 %v4647_v5  ;;  %v4675_v5 = vld [vmem:[#allocation13] sm:$0xff]  }
 0x350   :  { %4022 = vmatpush3.bf16.msra.mxu0 %v4648_v6 }
 0x351   :  { %4044 = vmatpush3.bf16.msra.mxu1 %v4649_v7  ;;  %4023 = vmatprep.subr.bf16.mxu0 %v4650_v8  ;;  %v4676_v8 = vld [vmem:[#allocation13 + $0x48] sm:$0xff]  }
 0x352   :  { %4045 = vmatprep.subr.bf16.mxu1 %v4651_v9 }
 0x354   :  { %4024 = vmatpush3.bf16.msra.mxu0 %v4652_v10  ;;  %v4677_v10 = vld [vmem:[#allocation13 + $0x8] sm:$0xff]  }
 0x355   :  { %4046 = vmatpush3.bf16.msra.mxu1 %v4653_v11  ;;  %4025 = vmatprep.subr.bf16.mxu0 %v4654_v12  ;;  %v4678_v11 = vld [vmem:[#allocation13 + $0x50] sm:$0xff]  }
 0x356   :  { %4047 = vmatprep.subr.bf16.mxu1 %v4655_v14  ;;  %v4679_v12 = vld [vmem:[#allocation13 + $0x10] sm:$0xff]   ;;  %v4680_v14 = vld [vmem:[#allocation13 + $0x58] sm:$0xff]  }
 0x358   :  { %4026 = vmatpush3.bf16.msra.mxu0 %v4656_v15  ;;  %v4681_v15 = vld [vmem:[#allocation13 + $0x18] sm:$0xff]  }
 0x359   :  { %4048 = vmatpush3.bf16.msra.mxu1 %v4657_v16  ;;  %4027 = vmatprep.subr.bf16.mxu0 %v4658_v17  ;;  %v4682_v16 = vld [vmem:[#allocation13 + $0x60] sm:$0xff]  }
 0x35a   :  { %4049 = vmatprep.subr.bf16.mxu1 %v4659_v18  ;;  %v4683_v17 = vld [vmem:[#allocation13 + $0x20] sm:$0xff]   ;;  %v4684_v18 = vld [vmem:[#allocation13 + $0x68] sm:$0xff]  }
 0x35c   :  { %4028 = vmatpush3.bf16.msra.mxu0 %v4660_v19  ;;  %v4685_v19 = vld [vmem:[#allocation13 + $0x28] sm:$0xff]  }
 0x35d   :  { %4050 = vmatpush3.bf16.msra.mxu1 %v4661_v20  ;;  %4029 = vmatprep.subr.bf16.mxu0 %v4662_v21  ;;  %v4686_v20 = vld [vmem:[#allocation13 + $0x70] sm:$0xff]  }
 0x35e   :  { %4051 = vmatprep.subr.bf16.mxu1 %v4663_v23  ;;  %v4687_v21 = vld [vmem:[#allocation13 + $0x30] sm:$0xff]   ;;  %v4688_v23 = vld [vmem:[#allocation13 + $0x78] sm:$0xff]  }
 0x360   :  { %4030 = vmatpush3.bf16.msra.mxu0 %v4664_v24  ;;  %v4689_v24 = vld [vmem:[#allocation13 + $0x38] sm:$0xff]  }
 0x361   :  { %4052 = vmatpush3.bf16.msra.mxu1 %v4665_v26  ;;  %4031 = vmatprep.subr.bf16.mxu0 %v4666_v27 }
 0x362   :  { %4053 = vmatprep.subr.bf16.mxu1 %v4667_v28  ;;  %v3925_v28 = vld [vmem:[%s5168_s7 + $0xd] ss:$0 sm:$0xff] }
 0x364   :  { %4032 = vmatpush3.bf16.msra.mxu0 %v4668_v29 }
 0x365   :  { %4054 = vmatpush3.bf16.msra.mxu1 %v4669_v30  ;;  %4033 = vmatprep.subr.bf16.mxu0 %v4670_v36 }
 0x366   :  { %4055 = vmatprep.subr.bf16.mxu1 %v4671_v37 }
 0x368   :  { %4034 = vmatpush3.bf16.msra.mxu0 %v4672_v38 }
 0x369   :  { %4056 = vmatpush3.bf16.msra.mxu1 %v4673_v39  ;;  %4063 = vmatprep.subr.bf16.mxu0 %v4674_v40 }
 0x3de   :  { %v3991_v41 = vpop.f32.mrb[8].mxu0 }
 0x3df   :  { %v4013_v42 = vpop.f32.mrb[12].mxu1  ;;  %v3992_v32 = vpop.f32.mrb[9].mxu0 }
 0x3e0   :  { %v3993_v44 = vadd.f32 %v3992_v32, %v3991_v41  ;;  %v4014_v0 = vpop.f32.mrb[13].mxu1  ;;  %v3994_v45 = vpop.f32.mrb[10].mxu0 }
 0x3e1   :  { %v4015_v46 = vadd.f32 %v4014_v0, %v4013_v42  ;;  %v4016_v47 = vpop.f32.mrb[14].mxu1  ;;  %v3995_v48 = vpop.f32.mrb[11].mxu0 }
 0x3e2   :  { %v2470_v49 = vadd.f32 %v3993_v44, %v3828_v43  ;;  %v4017_v51 = vpop.f32.mrb[15].mxu1 }
 0x3e4   :  { %v5130_v13 = vadd.f32 %v4015_v46, %v2470_v49  ;;  %v3534_v46 = vand.u32 127, %v336_v31  ;;  %v3958_v49 = vld [vmem:[%s5168_s7 + $0xe] ss:$0 sm:$0xff]  ;;  %s4876_s7 = scalar_lea.vmem %s3555_s5, 128 }
 0x3e5   :  { %p4877_p0 = scmp.ne.s32.totalorder %s3555_s5, %s4876_s7  ;;  %p4882_p2 = scmp.lt.s32.totalorder %s4876_s7, %s4876_s7 }
 0x3e6   :  { %vm3535_vm1 = vcmp.lt.s32.totalorder %v3534_v46, 49 }
 0x3e7   :  { %p4883_p3 = por %p4882_p2, %p4881_p1 }
 0x3e9   :  { %p4884_p4 = pnand %p4883_p3, %p4877_p0 }
 0x41e   :  { %v2957_v56 = vpop.f32.mrb[12].mxu0 }
 0x41f   :  { %v2958_v55 = vadd.f32 %v2957_v56, %v2586_v34  ;;  %v2998_v57 = vpop.f32.mrb[16].mxu1  ;;  %v2959_v58 = vpop.f32.mrb[13].mxu0 }
 0x420   :  { %v2999_v59 = vadd.f32 %v2998_v57, %v2594_v50  ;;  %v2960_v60 = vadd.f32 %v2959_v58, %v2590_v54  ;;  %v3000_v61 = vpop.f32.mrb[17].mxu1  ;;  %v2961_v62 = vpop.f32.mrb[14].mxu0 }
 0x421   :  { %4706 = vtanh.f32 %v2958_v55  ;;  %v3001_v63 = vadd.f32 %v3000_v61, %v2598_v52  ;;  %v3002_v1 = vpop.f32.mrb[18].mxu1  ;;  %v2962_v2 = vpop.f32.mrb[15].mxu0 }
 0x422   :  { %4708 = vtanh.f32 %v2999_v59  ;;  %v3003_v33 = vpop.f32.mrb[19].mxu1 }
 0x423   :  { %4710 = vtanh.f32 %v2960_v60 }
 0x424   :  { %4712 = vtanh.f32 %v3001_v63 }
 0x425   :  { %4714 = vtanh.f32 %v5130_v13 }
 0x42b   :  { %v4707_v25 = vpop.eup %4706 }
 0x42c   :  { %v4709_v35 = vpop.eup %4708  ;;  %v3009_v6 = vpack.c.bf16 %v4707_v25, %v4707_v25 }
 0x42d   :  { %v4711_v3 = vpop.eup %4710  ;;  %v3011_v9 = vpack.c.bf16 %v4709_v35, %v4709_v35 }
 0x42e   :  { %v4713_v22 = vpop.eup %4712  ;;  %v3010_v4 = vpack.c.bf16 %v4711_v3, %v4711_v3 }
 0x42f   :  { %v3012_v7 = vpack.c.bf16 %v4713_v22, %v4713_v22  ;;  %v4715_v32 = vpop.eup %4714 }
 0x430   :  { %3308 = vmatprep.mubr.bf16.mxu0 %v3010_v4  ;;  %v2516_v45 = vpack.c.bf16 %v4715_v32, %v4715_v32 }
 0x431   :  { %3348 = vmatprep.mubr.bf16.mxu1 %v3012_v7  ;;  %3309 = vmatmul.mubr.bf16.vlgmr.msra.gmra.mrb[16].mxu0 %v3009_v6 }
 0x432   :  { %3349 = vmatmul.mubr.bf16.vlgmr.msra.gmra.mrb[20].mxu1 %v3011_v9  ;;  %4064 = vmatpush3.bf16.msra.mxu0 %v4675_v5 }
 0x433   :  { %4065 = vmatprep.subr.bf16.mxu0 %v4676_v8 }
 0x436   :  { %4066 = vmatpush3.bf16.msra.mxu0 %v4677_v10 }
 0x437   :  { %4067 = vmatprep.subr.bf16.mxu0 %v4678_v11 }
 0x43a   :  { %4068 = vmatpush3.bf16.msra.mxu0 %v4679_v12 }
 0x43b   :  { %4069 = vmatprep.subr.bf16.mxu0 %v4680_v14 }
 0x43e   :  { %4070 = vmatpush3.bf16.msra.mxu0 %v4681_v15 }
 0x43f   :  { %4071 = vmatprep.subr.bf16.mxu0 %v4682_v16 }
 0x442   :  { %4072 = vmatpush3.bf16.msra.mxu0 %v4683_v17 }
 0x443   :  { %4073 = vmatprep.subr.bf16.mxu0 %v4684_v18 }
 0x446   :  { %4074 = vmatpush3.bf16.msra.mxu0 %v4685_v19 }
 0x447   :  { %4075 = vmatprep.subr.bf16.mxu0 %v4686_v20 }
 0x44a   :  { %4076 = vmatpush3.bf16.msra.mxu0 %v4687_v21 }
 0x44b   :  { %4077 = vmatprep.subr.bf16.mxu0 %v4688_v23 }
 0x44e   :  { %4078 = vmatpush3.bf16.msra.mxu0 %v4689_v24 }
 0x504   :  { %v4035_v26 = vpop.f32.mrb[16].mxu0 }
 0x505   :  { %v4057_v27 = vpop.f32.mrb[20].mxu1  ;;  %v4036_v29 = vpop.f32.mrb[17].mxu0 }
 0x506   :  { %v4037_v30 = vadd.f32 %v4036_v29, %v4035_v26  ;;  %v4058_v36 = vpop.f32.mrb[21].mxu1  ;;  %v4038_v37 = vpop.f32.mrb[18].mxu0 }
 0x507   :  { %v4059_v38 = vadd.f32 %v4058_v36, %v4057_v27  ;;  %v4060_v39 = vpop.f32.mrb[22].mxu1  ;;  %v4039_v40 = vpop.f32.mrb[19].mxu0 }
 0x508   :  { %v3311_v41 = vadd.f32 %v4037_v30, %v3925_v28  ;;  %v4061_v42 = vpop.f32.mrb[23].mxu1 }
 0x50a   :  { %v3351_v43 = vadd.f32 %v4059_v38, %v3311_v41 }
 0x50c   :  { %4716 = vtanh.f32 %v3351_v43 }
 0x516   :  { %v4717_v44 = vpop.eup %4716 }
 0x517   :  { %v3357_v0 = vpack.c.bf16 %v4717_v44, %v4717_v44 }
 0x519   :  { %3525 = vmatprep.mubr.bf16.mxu0 %v3357_v0 }
 0x51a   :  { %3526 = vmatmul.mubr.bf16.vlgmr.msra.gmra.mrb[20].mxu0 %v2516_v45 }
 0x5ed   :  { %v4079_v47 = vpop.f32.mrb[20].mxu0 }
 0x5ee   :  { %v4080_v48 = vpop.f32.mrb[21].mxu0 }
 0x5ef   :  { %v4081_v51 = vadd.f32 %v4080_v48, %v4079_v47  ;;  %v4082_v53 = vpop.f32.mrb[22].mxu0 }
 0x5f0   :  { %v4083_v34 = vpop.f32.mrb[23].mxu0 }
 0x5f1   :  { %v3528_v13 = vadd.f32 %v4081_v51, %v3958_v49 }
 0x5f3   :  { %v3536_v50 = vsel %vm3535_vm1, %v3528_v13, -inf }
 0x5f4   :  { %3537 = vmax.xlane.f32.xlu0 %v3536_v50 }
 0x681   :  { %v3538_v54 = vpop.xlane.xlu0 %3537 }
 0x682   :  { %v3539_v52 = vsub.f32 %v3536_v50, %v3538_v54 }
 0x684   :  { %v3540_v56 = vmul.f32 1.442695, %v3539_v52 }
 0x686   :  { %4718 = vpow2.f32 %v3540_v56 }
 0x690   :  { %v4719_v55 = vpop.eup %4718 }
 0x691   :  { %3542 = vadd.xlane.f32.xlu0 %v4719_v55 }
 0x71e   :  { %v3543_v31 = vpop.xlane.xlu0 %3542 }
 0x71f   :  { %4720 = vrcp.f32 %v3543_v31 }
 0x729   :  { %v4721_v57 = vpop.eup %4720 }
 0x72a   :  { %v3545_v58 = vmul.f32 %v4721_v57, %v4719_v55 }
 0x72c   :  { %v3546_v59 = vsel %vm3535_vm1, %v3545_v58, %v3528_v13 }
 0x72d   :  { %3547 = vst [vmem:[#allocation14] sm:$0xff] %v3546_v59 }
 0x72e   :  { %4887 = shalt.err (!%p4884_p4)
}
 0x72f   :  { %s4888_s14 = scalar_lea.hbm %s5169_s8, 128 }
 0x730   :  { %p4889_p5 = scmp.ne.s32.totalorder %s5169_s8, %s4888_s14  ;;  %p4892_p6 = scmp.lt.u32.totalorder %s4888_s14, %s5169_s8 }
 0x732   :  { %p4894_p7 = pnand %p4892_p6, %p4889_p5 }
 0x734   :  { %4897 = shalt.err (!%p4894_p7)
}
 0x735   :  { %3557 = dma.vmem_to_hbm [thread:$0]  %s3555_s5, 128, %s5169_s8, [#allocation4]  }
 0x736   :  { %4906 = dma.done.wait [#allocation4], 128  }
 0x737   :  { %4907 = vsyncadd [#allocation4], 4294967168 }
 0x738   :  { %3561 = vsyncpa [#allocation3], 1 }
 0x739   :  { %3562 = vsyncpa [#allocation6], 1 }
 0x73a   :  { %3563 = vsyncpa [#allocation9], 1 }
 0x73b   :  { %3564 = vsyncpa [#allocation12], 1 }
 0x73c   :  { %3565 = vsyncpa [#allocation4], 1 }

</bundles_post_ra>
